<compile_context>
chip_gen: v5e
topology: v5e:2x2
jax: 0.10.0
libtpu: 0.0.40
codegen_flags: <defaults>
</compile_context>

<pallas_src>
import math

import jax
import jax.numpy as jnp
from jax.experimental import pallas as pl
from jax.experimental.pallas import tpu as pltpu

HIDDEN = 32     # module default is 256; small deterministic size for the demo
FEATURE = 3
BATCH = 4
SEQ = 8
HP = 128        # lane-padded fused per-gate block width (>= 2*HIDDEN)
OUT_PAD = 128   # lane-dense padded width for the 3-class output


def lstm_head_kernel(xa_ref, w_in_ref, b_in_ref, w_hh_ref,
                     w2_ref, b2_ref, w3_ref, b3_ref, w4_ref, b4_ref,
                     out_ref):
    Bp = out_ref.shape[0]               # padded batch (multiple of 8)
    TB = xa_ref.shape[0]                # T * Bp (time-major rows)
    T = TB // Bp
    Hp = w_hh_ref.shape[0]              # 128: [h_fwd | h_bwd | zero pad]
    GS = 3 * Hp                         # width of the sigmoid gates [I|F|O]

    # ---- hoisted input projection: one wide bf16 matmul, bias folded in ----
    # xa is time-major, so per-step reads below are aligned leading-dim slices.
    proj = (jnp.dot(xa_ref[...], w_in_ref[...],
                    preferred_element_type=jnp.float32)
            + b_in_ref[...])                              # (T*Bp, 4*Hp) f32

    w_hh = w_hh_ref[...]                                  # (Hp, 4*Hp) bf16

    h = jnp.zeros((Bp, Hp), jnp.float32)                  # [h_fwd|h_bwd|0]
    c = jnp.zeros((Bp, Hp), jnp.float32)

    # ---- fully-unrolled recurrence: 1 bf16 MXU matmul / step ----------------
    for t in range(T):
        p_t = proj[t * Bp:(t + 1) * Bp, :]                # aligned (Bp, 4*Hp)
        gates = (jnp.dot(h.astype(jnp.bfloat16), w_hh,
                         preferred_element_type=jnp.float32) + p_t)
        s = jax.nn.sigmoid(gates[:, :GS])                 # [I|F|O] only
        g = jnp.tanh(gates[:, GS:])                       # [G] only
        i_all = s[:, 0 * Hp:1 * Hp]
        f_all = s[:, 1 * Hp:2 * Hp]
        o_all = s[:, 2 * Hp:3 * Hp]
        c = f_all * c + i_all * g
        h = o_all * jnp.tanh(c)

    # h[:, :2H] == torch.cat([h_n[0], h_n[1]], dim=1); pad columns are 0.

    # layer2: Linear(2H -> 128) with eval BatchNorm folded in, then ReLU.
    z = jnp.dot(h, w2_ref[...], preferred_element_type=jnp.float32) + b2_ref[...]
    z = jnp.maximum(z, 0.0)

    # layer3: Linear(128 -> 64) -> Dropout(0.3) [identity in eval] -> ReLU.
    z = jnp.dot(z, w3_ref[...], preferred_element_type=jnp.float32) + b3_ref[...]
    z = jnp.maximum(z, 0.0)

    # layer4: Linear(64 -> 3, lane-padded to 128) -> Softmax(dim=1).
    logits = jnp.dot(z, w4_ref[...], preferred_element_type=jnp.float32) + b4_ref[...]
    m = jnp.max(logits, axis=1, keepdims=True)
    e = jnp.exp(logits - m)                               # pad cols -> exp(-1e30)=0
    out_ref[...] = e / jnp.sum(e, axis=1, keepdims=True)


def lstm_forward(x, p):
    """x: (B, T, F) batch-first float32 (PyTorch convention)."""
    B, T, F = x.shape
    H = HIDDEN
    Bp = ((B + 7) // 8) * 8             # pad batch to the f32 sublane minimum

    def remap_cols(wf, wb):
        # Per-direction PyTorch gate order [i,f,g,o] -> fused gate-major layout
        # [I|F|O|G] (sigmoid gates first, tanh gate last); each block is HP
        # lanes wide: [fwd(H) | bwd(H) | zero pad].
        lead = wf.shape[:-1]
        pad = jnp.zeros(lead + (HP - 2 * H,), jnp.float32)
        blocks = []
        for k in (0, 1, 3, 2):          # i, f, o, g
            blocks += [wf[..., k * H:(k + 1) * H], wb[..., k * H:(k + 1) * H], pad]
        return jnp.concatenate(blocks, axis=-1)

    # Fused input-projection weight (2F, 4*HP): rows 0:F feed the forward gate
    # columns, rows F:2F feed the backward gate columns.
    w_in = jnp.concatenate(
        [remap_cols(p["wih_f"], jnp.zeros_like(p["wih_b"])),
         remap_cols(jnp.zeros_like(p["wih_f"]), p["wih_b"])], axis=0)
    b_in = remap_cols(p["bf"], p["bb"])                               # (1, 4*HP)

    # Block-diagonal recurrent weight (HP, 4*HP); pad rows/cols are zero.
    w_hh = jnp.concatenate(
        [remap_cols(p["whh_f"], jnp.zeros_like(p["whh_b"])),
         remap_cols(jnp.zeros_like(p["whh_f"]), p["whh_b"]),
         jnp.zeros((HP - 2 * H, 4 * HP), jnp.float32)], axis=0)

    # Batch pad + augmented time-major input xa[t*Bp+b] = [x[b,t] | x[b,T-1-t]].
    xp = jnp.zeros((Bp, T, F), jnp.float32).at[:B].set(x.astype(jnp.float32))
    xa = jnp.concatenate([xp, xp[:, ::-1, :]], axis=-1)               # (Bp,T,2F)
    xa_tm = jnp.transpose(xa, (1, 0, 2)).reshape(T * Bp, 2 * F)       # (T*Bp,2F)

    # Fold eval-mode BatchNorm into layer2; pad its rows to HP (zero pad rows).
    scale = p["gamma"] * jax.lax.rsqrt(p["var"] + 1e-5)               # (1,128)
    w2f = p["w2"] * scale
    b2f = (p["b2"] - p["mean"]) * scale + p["beta"]
    w2p = jnp.zeros((HP, 128), jnp.float32).at[:2 * H, :].set(w2f)

    # Lane-dense padded 3-class head (pad logits get bias -1e30 -> softmax 0).
    w4p = jnp.zeros((p["w4"].shape[0], OUT_PAD), jnp.float32).at[:, :3].set(p["w4"])
    b4p = jnp.full((1, OUT_PAD), -1e30, jnp.float32).at[:, :3].set(p["b4"])

    args = (xa_tm.astype(jnp.bfloat16),
            w_in.astype(jnp.bfloat16), b_in, w_hh.astype(jnp.bfloat16),
            w2p, b2f, p["w3"], p["b3"], w4p, b4p)
    out_pad = pl.pallas_call(
        lstm_head_kernel,
        out_shape=jax.ShapeDtypeStruct((Bp, OUT_PAD), jnp.float32),
        in_specs=[pl.BlockSpec(memory_space=pltpu.MemorySpace.VMEM)] * len(args),
        out_specs=pl.BlockSpec(memory_space=pltpu.MemorySpace.VMEM),
    )(*args)
    return out_pad[:B, :3]


def init_params(key):
    H, F = HIDDEN, FEATURE
    ks = jax.random.split(key, 14)

    def u(k, shape, bound):
        return jax.random.uniform(k, shape, jnp.float32, -bound, bound)

    k_l = 1.0 / math.sqrt(H)          # PyTorch LSTM init bound
    wih_f = u(ks[0], (F, 4 * H), k_l)
    whh_f = u(ks[1], (H, 4 * H), k_l)
    bf = u(ks[2], (1, 4 * H), k_l) + u(ks[3], (1, 4 * H), k_l)   # b_ih + b_hh
    wih_b = u(ks[4], (F, 4 * H), k_l)
    whh_b = u(ks[5], (H, 4 * H), k_l)
    bb = u(ks[6], (1, 4 * H), k_l) + u(ks[7], (1, 4 * H), k_l)

    k2 = 1.0 / math.sqrt(2 * H)
    w2 = u(ks[8], (2 * H, 128), k2)
    b2 = u(ks[9], (1, 128), k2)
    k3 = 1.0 / math.sqrt(128)
    w3 = u(ks[10], (128, 64), k3)
    b3 = u(ks[11], (1, 64), k3)
    k4 = 1.0 / math.sqrt(64)
    w4 = u(ks[12], (64, 3), k4)
    b4 = u(ks[13], (1, 3), k4)

    return dict(
        wih_f=wih_f, whh_f=whh_f, bf=bf,
        wih_b=wih_b, whh_b=whh_b, bb=bb,
        w2=w2, b2=b2, w3=w3, b3=b3, w4=w4, b4=b4,
        gamma=jnp.ones((1, 128), jnp.float32),
        beta=jnp.zeros((1, 128), jnp.float32),
        mean=jnp.zeros((1, 128), jnp.float32),
        var=jnp.ones((1, 128), jnp.float32),
    )


def reference_forward(x, p):
    """Pure-JAX reference mirroring the PyTorch forward (eval mode), f32."""
    B, T, _F = x.shape
    H = HIDDEN

    def run(xs, wih, whh, b):
        h = jnp.zeros((B, H), jnp.float32)
        c = jnp.zeros((B, H), jnp.float32)
        for t in range(T):
            g = xs[:, t, :] @ wih + h @ whh + b
            i = jax.nn.sigmoid(g[:, :H])
            f = jax.nn.sigmoid(g[:, H:2 * H])
            gg = jnp.tanh(g[:, 2 * H:3 * H])
            o = jax.nn.sigmoid(g[:, 3 * H:])
            c = f * c + i * gg
            h = o * jnp.tanh(c)
        return h

    hf = run(x, p["wih_f"], p["whh_f"], p["bf"])
    hb = run(x[:, ::-1, :], p["wih_b"], p["whh_b"], p["bb"])
    z = jnp.concatenate([hf, hb], axis=1)
    z = z @ p["w2"] + p["b2"]
    z = (z - p["mean"]) * jax.lax.rsqrt(p["var"] + 1e-5) * p["gamma"] + p["beta"]
    z = jnp.maximum(z, 0.0)
    z = jnp.maximum(z @ p["w3"] + p["b3"], 0.0)
    logits = z @ p["w4"] + p["b4"]
    return jax.nn.softmax(logits, axis=1)


if __name__ == "__main__":
    key = jax.random.PRNGKey(0)
    pkey, xkey = jax.random.split(key)
    params = init_params(pkey)
    x = jax.random.normal(xkey, (BATCH, SEQ, FEATURE), jnp.float32)

    out = jax.block_until_ready(lstm_forward(x, params))
    ref = jax.block_until_ready(reference_forward(x, params))

    assert out.shape == (BATCH, 3), out.shape
    assert jnp.allclose(out, ref, rtol=2e-2, atol=2e-3), (out, ref)
    print("KERNEL_OK")
</pallas_src>

<mosaic_0001>
module attributes {stable_mosaic.version = 11 : i64} {
  func.func @lstm_head_kernel(%arg0: memref<64x6xbf16, #tpu.memory_space<vmem>>, %arg1: memref<6x512xbf16, #tpu.memory_space<vmem>>, %arg2: memref<1x512xf32, #tpu.memory_space<vmem>>, %arg3: memref<128x512xbf16, #tpu.memory_space<vmem>>, %arg4: memref<128x128xf32, #tpu.memory_space<vmem>>, %arg5: memref<1x128xf32, #tpu.memory_space<vmem>>, %arg6: memref<128x64xf32, #tpu.memory_space<vmem>>, %arg7: memref<1x64xf32, #tpu.memory_space<vmem>>, %arg8: memref<64x128xf32, #tpu.memory_space<vmem>>, %arg9: memref<1x128xf32, #tpu.memory_space<vmem>>, %arg10: memref<8x128xf32, #tpu.memory_space<vmem>>) attributes {dimension_semantics = [], scalar_prefetch = 0 : i64, scratch_operands = 0 : i64, tpu.core_type = #tpu.core_type<tc>} {
    %c0 = arith.constant 0 : index
    %c0_0 = arith.constant 0 : index
    %0 = vector.load %arg0[%c0, %c0_0] : memref<64x6xbf16, #tpu.memory_space<vmem>>, vector<64x6xbf16>
    %c0_1 = arith.constant 0 : index
    %c0_2 = arith.constant 0 : index
    %1 = vector.load %arg1[%c0_1, %c0_2] : memref<6x512xbf16, #tpu.memory_space<vmem>>, vector<6x512xbf16>
    %cst = arith.constant dense<0.000000e+00> : vector<64x512xf32>
    %2 = tpu.matmul %0, %1, %cst {dimension_numbers = #tpu.dot_dimension_numbers<[1], [0], [0], [1], [0, 0, 1, 1], [], []>} : vector<64x6xbf16>, vector<6x512xbf16>, vector<64x512xf32> -> vector<64x512xf32>
    %c0_3 = arith.constant 0 : index
    %c0_4 = arith.constant 0 : index
    %3 = vector.load %arg2[%c0_3, %c0_4] : memref<1x512xf32, #tpu.memory_space<vmem>>, vector<1x512xf32>
    %4 = vector.broadcast %3 : vector<1x512xf32> to vector<64x512xf32>
    %5 = arith.addf %2, %4 : vector<64x512xf32>
    %c0_5 = arith.constant 0 : index
    %c0_6 = arith.constant 0 : index
    %6 = vector.load %arg3[%c0_5, %c0_6] : memref<128x512xbf16, #tpu.memory_space<vmem>>, vector<128x512xbf16>
    %cst_7 = arith.constant 0.000000e+00 : f32
    %7 = vector.broadcast %cst_7 : f32 to vector<8x128xf32>
    %cst_8 = arith.constant 0.000000e+00 : f32
    %8 = vector.broadcast %cst_8 : f32 to vector<8x128xf32>
    %9 = vector.extract_strided_slice %5 {offsets = [0, 0], sizes = [8, 512], strides = [1, 1]} : vector<64x512xf32> to vector<8x512xf32>
    %10 = arith.truncf %7 : vector<8x128xf32> to vector<8x128xbf16>
    %cst_9 = arith.constant dense<0.000000e+00> : vector<8x512xf32>
    %11 = tpu.matmul %10, %6, %cst_9 {dimension_numbers = #tpu.dot_dimension_numbers<[1], [0], [0], [1], [0, 0, 1, 1], [], []>} : vector<8x128xbf16>, vector<128x512xbf16>, vector<8x512xf32> -> vector<8x512xf32>
    %12 = arith.addf %11, %9 : vector<8x512xf32>
    %13 = vector.extract_strided_slice %12 {offsets = [0, 0], sizes = [8, 384], strides = [1, 1]} : vector<8x512xf32> to vector<8x384xf32>
    %14 = arith.negf %13 : vector<8x384xf32>
    %15 = math.exp %14 : vector<8x384xf32>
    %cst_10 = arith.constant 1.000000e+00 : f32
    %16 = vector.broadcast %cst_10 : f32 to vector<8x384xf32>
    %17 = arith.addf %16, %15 : vector<8x384xf32>
    %18 = arith.divf %16, %17 : vector<8x384xf32>
    %19 = vector.extract_strided_slice %12 {offsets = [0, 384], sizes = [8, 128], strides = [1, 1]} : vector<8x512xf32> to vector<8x128xf32>
    %20 = math.tanh %19 : vector<8x128xf32>
    %21 = vector.extract_strided_slice %18 {offsets = [0, 0], sizes = [8, 128], strides = [1, 1]} : vector<8x384xf32> to vector<8x128xf32>
    %22 = vector.extract_strided_slice %18 {offsets = [0, 128], sizes = [8, 128], strides = [1, 1]} : vector<8x384xf32> to vector<8x128xf32>
    %23 = vector.extract_strided_slice %18 {offsets = [0, 256], sizes = [8, 128], strides = [1, 1]} : vector<8x384xf32> to vector<8x128xf32>
    %24 = arith.mulf %22, %8 : vector<8x128xf32>
    %25 = arith.mulf %21, %20 : vector<8x128xf32>
    %26 = arith.addf %24, %25 : vector<8x128xf32>
    %27 = math.tanh %26 : vector<8x128xf32>
    %28 = arith.mulf %23, %27 : vector<8x128xf32>
    %29 = vector.extract_strided_slice %5 {offsets = [8, 0], sizes = [8, 512], strides = [1, 1]} : vector<64x512xf32> to vector<8x512xf32>
    %30 = arith.truncf %28 : vector<8x128xf32> to vector<8x128xbf16>
    %cst_11 = arith.constant dense<0.000000e+00> : vector<8x512xf32>
    %31 = tpu.matmul %30, %6, %cst_11 {dimension_numbers = #tpu.dot_dimension_numbers<[1], [0], [0], [1], [0, 0, 1, 1], [], []>} : vector<8x128xbf16>, vector<128x512xbf16>, vector<8x512xf32> -> vector<8x512xf32>
    %32 = arith.addf %31, %29 : vector<8x512xf32>
    %33 = vector.extract_strided_slice %32 {offsets = [0, 0], sizes = [8, 384], strides = [1, 1]} : vector<8x512xf32> to vector<8x384xf32>
    %34 = arith.negf %33 : vector<8x384xf32>
    %35 = math.exp %34 : vector<8x384xf32>
    %cst_12 = arith.constant 1.000000e+00 : f32
    %36 = vector.broadcast %cst_12 : f32 to vector<8x384xf32>
    %37 = arith.addf %36, %35 : vector<8x384xf32>
    %38 = arith.divf %36, %37 : vector<8x384xf32>
    %39 = vector.extract_strided_slice %32 {offsets = [0, 384], sizes = [8, 128], strides = [1, 1]} : vector<8x512xf32> to vector<8x128xf32>
    %40 = math.tanh %39 : vector<8x128xf32>
    %41 = vector.extract_strided_slice %38 {offsets = [0, 0], sizes = [8, 128], strides = [1, 1]} : vector<8x384xf32> to vector<8x128xf32>
    %42 = vector.extract_strided_slice %38 {offsets = [0, 128], sizes = [8, 128], strides = [1, 1]} : vector<8x384xf32> to vector<8x128xf32>
    %43 = vector.extract_strided_slice %38 {offsets = [0, 256], sizes = [8, 128], strides = [1, 1]} : vector<8x384xf32> to vector<8x128xf32>
    %44 = arith.mulf %42, %26 : vector<8x128xf32>
    %45 = arith.mulf %41, %40 : vector<8x128xf32>
    %46 = arith.addf %44, %45 : vector<8x128xf32>
    %47 = math.tanh %46 : vector<8x128xf32>
    %48 = arith.mulf %43, %47 : vector<8x128xf32>
    %49 = vector.extract_strided_slice %5 {offsets = [16, 0], sizes = [8, 512], strides = [1, 1]} : vector<64x512xf32> to vector<8x512xf32>
    %50 = arith.truncf %48 : vector<8x128xf32> to vector<8x128xbf16>
    %cst_13 = arith.constant dense<0.000000e+00> : vector<8x512xf32>
    %51 = tpu.matmul %50, %6, %cst_13 {dimension_numbers = #tpu.dot_dimension_numbers<[1], [0], [0], [1], [0, 0, 1, 1], [], []>} : vector<8x128xbf16>, vector<128x512xbf16>, vector<8x512xf32> -> vector<8x512xf32>
    %52 = arith.addf %51, %49 : vector<8x512xf32>
    %53 = vector.extract_strided_slice %52 {offsets = [0, 0], sizes = [8, 384], strides = [1, 1]} : vector<8x512xf32> to vector<8x384xf32>
    %54 = arith.negf %53 : vector<8x384xf32>
    %55 = math.exp %54 : vector<8x384xf32>
    %cst_14 = arith.constant 1.000000e+00 : f32
    %56 = vector.broadcast %cst_14 : f32 to vector<8x384xf32>
    %57 = arith.addf %56, %55 : vector<8x384xf32>
    %58 = arith.divf %56, %57 : vector<8x384xf32>
    %59 = vector.extract_strided_slice %52 {offsets = [0, 384], sizes = [8, 128], strides = [1, 1]} : vector<8x512xf32> to vector<8x128xf32>
    %60 = math.tanh %59 : vector<8x128xf32>
    %61 = vector.extract_strided_slice %58 {offsets = [0, 0], sizes = [8, 128], strides = [1, 1]} : vector<8x384xf32> to vector<8x128xf32>
    %62 = vector.extract_strided_slice %58 {offsets = [0, 128], sizes = [8, 128], strides = [1, 1]} : vector<8x384xf32> to vector<8x128xf32>
    %63 = vector.extract_strided_slice %58 {offsets = [0, 256], sizes = [8, 128], strides = [1, 1]} : vector<8x384xf32> to vector<8x128xf32>
    %64 = arith.mulf %62, %46 : vector<8x128xf32>
    %65 = arith.mulf %61, %60 : vector<8x128xf32>
    %66 = arith.addf %64, %65 : vector<8x128xf32>
    %67 = math.tanh %66 : vector<8x128xf32>
    %68 = arith.mulf %63, %67 : vector<8x128xf32>
    %69 = vector.extract_strided_slice %5 {offsets = [24, 0], sizes = [8, 512], strides = [1, 1]} : vector<64x512xf32> to vector<8x512xf32>
    %70 = arith.truncf %68 : vector<8x128xf32> to vector<8x128xbf16>
    %cst_15 = arith.constant dense<0.000000e+00> : vector<8x512xf32>
    %71 = tpu.matmul %70, %6, %cst_15 {dimension_numbers = #tpu.dot_dimension_numbers<[1], [0], [0], [1], [0, 0, 1, 1], [], []>} : vector<8x128xbf16>, vector<128x512xbf16>, vector<8x512xf32> -> vector<8x512xf32>
    %72 = arith.addf %71, %69 : vector<8x512xf32>
    %73 = vector.extract_strided_slice %72 {offsets = [0, 0], sizes = [8, 384], strides = [1, 1]} : vector<8x512xf32> to vector<8x384xf32>
    %74 = arith.negf %73 : vector<8x384xf32>
    %75 = math.exp %74 : vector<8x384xf32>
    %cst_16 = arith.constant 1.000000e+00 : f32
    %76 = vector.broadcast %cst_16 : f32 to vector<8x384xf32>
    %77 = arith.addf %76, %75 : vector<8x384xf32>
    %78 = arith.divf %76, %77 : vector<8x384xf32>
    %79 = vector.extract_strided_slice %72 {offsets = [0, 384], sizes = [8, 128], strides = [1, 1]} : vector<8x512xf32> to vector<8x128xf32>
    %80 = math.tanh %79 : vector<8x128xf32>
    %81 = vector.extract_strided_slice %78 {offsets = [0, 0], sizes = [8, 128], strides = [1, 1]} : vector<8x384xf32> to vector<8x128xf32>
    %82 = vector.extract_strided_slice %78 {offsets = [0, 128], sizes = [8, 128], strides = [1, 1]} : vector<8x384xf32> to vector<8x128xf32>
    %83 = vector.extract_strided_slice %78 {offsets = [0, 256], sizes = [8, 128], strides = [1, 1]} : vector<8x384xf32> to vector<8x128xf32>
    %84 = arith.mulf %82, %66 : vector<8x128xf32>
    %85 = arith.mulf %81, %80 : vector<8x128xf32>
    %86 = arith.addf %84, %85 : vector<8x128xf32>
    %87 = math.tanh %86 : vector<8x128xf32>
    %88 = arith.mulf %83, %87 : vector<8x128xf32>
    %89 = vector.extract_strided_slice %5 {offsets = [32, 0], sizes = [8, 512], strides = [1, 1]} : vector<64x512xf32> to vector<8x512xf32>
    %90 = arith.truncf %88 : vector<8x128xf32> to vector<8x128xbf16>
    %cst_17 = arith.constant dense<0.000000e+00> : vector<8x512xf32>
    %91 = tpu.matmul %90, %6, %cst_17 {dimension_numbers = #tpu.dot_dimension_numbers<[1], [0], [0], [1], [0, 0, 1, 1], [], []>} : vector<8x128xbf16>, vector<128x512xbf16>, vector<8x512xf32> -> vector<8x512xf32>
    %92 = arith.addf %91, %89 : vector<8x512xf32>
    %93 = vector.extract_strided_slice %92 {offsets = [0, 0], sizes = [8, 384], strides = [1, 1]} : vector<8x512xf32> to vector<8x384xf32>
    %94 = arith.negf %93 : vector<8x384xf32>
    %95 = math.exp %94 : vector<8x384xf32>
    %cst_18 = arith.constant 1.000000e+00 : f32
    %96 = vector.broadcast %cst_18 : f32 to vector<8x384xf32>
    %97 = arith.addf %96, %95 : vector<8x384xf32>
    %98 = arith.divf %96, %97 : vector<8x384xf32>
    %99 = vector.extract_strided_slice %92 {offsets = [0, 384], sizes = [8, 128], strides = [1, 1]} : vector<8x512xf32> to vector<8x128xf32>
    %100 = math.tanh %99 : vector<8x128xf32>
    %101 = vector.extract_strided_slice %98 {offsets = [0, 0], sizes = [8, 128], strides = [1, 1]} : vector<8x384xf32> to vector<8x128xf32>
    %102 = vector.extract_strided_slice %98 {offsets = [0, 128], sizes = [8, 128], strides = [1, 1]} : vector<8x384xf32> to vector<8x128xf32>
    %103 = vector.extract_strided_slice %98 {offsets = [0, 256], sizes = [8, 128], strides = [1, 1]} : vector<8x384xf32> to vector<8x128xf32>
    %104 = arith.mulf %102, %86 : vector<8x128xf32>
    %105 = arith.mulf %101, %100 : vector<8x128xf32>
    %106 = arith.addf %104, %105 : vector<8x128xf32>
    %107 = math.tanh %106 : vector<8x128xf32>
    %108 = arith.mulf %103, %107 : vector<8x128xf32>
    %109 = vector.extract_strided_slice %5 {offsets = [40, 0], sizes = [8, 512], strides = [1, 1]} : vector<64x512xf32> to vector<8x512xf32>
    %110 = arith.truncf %108 : vector<8x128xf32> to vector<8x128xbf16>
    %cst_19 = arith.constant dense<0.000000e+00> : vector<8x512xf32>
    %111 = tpu.matmul %110, %6, %cst_19 {dimension_numbers = #tpu.dot_dimension_numbers<[1], [0], [0], [1], [0, 0, 1, 1], [], []>} : vector<8x128xbf16>, vector<128x512xbf16>, vector<8x512xf32> -> vector<8x512xf32>
    %112 = arith.addf %111, %109 : vector<8x512xf32>
    %113 = vector.extract_strided_slice %112 {offsets = [0, 0], sizes = [8, 384], strides = [1, 1]} : vector<8x512xf32> to vector<8x384xf32>
    %114 = arith.negf %113 : vector<8x384xf32>
    %115 = math.exp %114 : vector<8x384xf32>
    %cst_20 = arith.constant 1.000000e+00 : f32
    %116 = vector.broadcast %cst_20 : f32 to vector<8x384xf32>
    %117 = arith.addf %116, %115 : vector<8x384xf32>
    %118 = arith.divf %116, %117 : vector<8x384xf32>
    %119 = vector.extract_strided_slice %112 {offsets = [0, 384], sizes = [8, 128], strides = [1, 1]} : vector<8x512xf32> to vector<8x128xf32>
    %120 = math.tanh %119 : vector<8x128xf32>
    %121 = vector.extract_strided_slice %118 {offsets = [0, 0], sizes = [8, 128], strides = [1, 1]} : vector<8x384xf32> to vector<8x128xf32>
    %122 = vector.extract_strided_slice %118 {offsets = [0, 128], sizes = [8, 128], strides = [1, 1]} : vector<8x384xf32> to vector<8x128xf32>
    %123 = vector.extract_strided_slice %118 {offsets = [0, 256], sizes = [8, 128], strides = [1, 1]} : vector<8x384xf32> to vector<8x128xf32>
    %124 = arith.mulf %122, %106 : vector<8x128xf32>
    %125 = arith.mulf %121, %120 : vector<8x128xf32>
    %126 = arith.addf %124, %125 : vector<8x128xf32>
    %127 = math.tanh %126 : vector<8x128xf32>
    %128 = arith.mulf %123, %127 : vector<8x128xf32>
    %129 = vector.extract_strided_slice %5 {offsets = [48, 0], sizes = [8, 512], strides = [1, 1]} : vector<64x512xf32> to vector<8x512xf32>
    %130 = arith.truncf %128 : vector<8x128xf32> to vector<8x128xbf16>
    %cst_21 = arith.constant dense<0.000000e+00> : vector<8x512xf32>
    %131 = tpu.matmul %130, %6, %cst_21 {dimension_numbers = #tpu.dot_dimension_numbers<[1], [0], [0], [1], [0, 0, 1, 1], [], []>} : vector<8x128xbf16>, vector<128x512xbf16>, vector<8x512xf32> -> vector<8x512xf32>
    %132 = arith.addf %131, %129 : vector<8x512xf32>
    %133 = vector.extract_strided_slice %132 {offsets = [0, 0], sizes = [8, 384], strides = [1, 1]} : vector<8x512xf32> to vector<8x384xf32>
    %134 = arith.negf %133 : vector<8x384xf32>
    %135 = math.exp %134 : vector<8x384xf32>
    %cst_22 = arith.constant 1.000000e+00 : f32
    %136 = vector.broadcast %cst_22 : f32 to vector<8x384xf32>
    %137 = arith.addf %136, %135 : vector<8x384xf32>
    %138 = arith.divf %136, %137 : vector<8x384xf32>
    %139 = vector.extract_strided_slice %132 {offsets = [0, 384], sizes = [8, 128], strides = [1, 1]} : vector<8x512xf32> to vector<8x128xf32>
    %140 = math.tanh %139 : vector<8x128xf32>
    %141 = vector.extract_strided_slice %138 {offsets = [0, 0], sizes = [8, 128], strides = [1, 1]} : vector<8x384xf32> to vector<8x128xf32>
    %142 = vector.extract_strided_slice %138 {offsets = [0, 128], sizes = [8, 128], strides = [1, 1]} : vector<8x384xf32> to vector<8x128xf32>
    %143 = vector.extract_strided_slice %138 {offsets = [0, 256], sizes = [8, 128], strides = [1, 1]} : vector<8x384xf32> to vector<8x128xf32>
    %144 = arith.mulf %142, %126 : vector<8x128xf32>
    %145 = arith.mulf %141, %140 : vector<8x128xf32>
    %146 = arith.addf %144, %145 : vector<8x128xf32>
    %147 = math.tanh %146 : vector<8x128xf32>
    %148 = arith.mulf %143, %147 : vector<8x128xf32>
    %149 = vector.extract_strided_slice %5 {offsets = [56, 0], sizes = [8, 512], strides = [1, 1]} : vector<64x512xf32> to vector<8x512xf32>
    %150 = arith.truncf %148 : vector<8x128xf32> to vector<8x128xbf16>
    %cst_23 = arith.constant dense<0.000000e+00> : vector<8x512xf32>
    %151 = tpu.matmul %150, %6, %cst_23 {dimension_numbers = #tpu.dot_dimension_numbers<[1], [0], [0], [1], [0, 0, 1, 1], [], []>} : vector<8x128xbf16>, vector<128x512xbf16>, vector<8x512xf32> -> vector<8x512xf32>
    %152 = arith.addf %151, %149 : vector<8x512xf32>
    %153 = vector.extract_strided_slice %152 {offsets = [0, 0], sizes = [8, 384], strides = [1, 1]} : vector<8x512xf32> to vector<8x384xf32>
    %154 = arith.negf %153 : vector<8x384xf32>
    %155 = math.exp %154 : vector<8x384xf32>
    %cst_24 = arith.constant 1.000000e+00 : f32
    %156 = vector.broadcast %cst_24 : f32 to vector<8x384xf32>
    %157 = arith.addf %156, %155 : vector<8x384xf32>
    %158 = arith.divf %156, %157 : vector<8x384xf32>
    %159 = vector.extract_strided_slice %152 {offsets = [0, 384], sizes = [8, 128], strides = [1, 1]} : vector<8x512xf32> to vector<8x128xf32>
    %160 = math.tanh %159 : vector<8x128xf32>
    %161 = vector.extract_strided_slice %158 {offsets = [0, 0], sizes = [8, 128], strides = [1, 1]} : vector<8x384xf32> to vector<8x128xf32>
    %162 = vector.extract_strided_slice %158 {offsets = [0, 128], sizes = [8, 128], strides = [1, 1]} : vector<8x384xf32> to vector<8x128xf32>
    %163 = vector.extract_strided_slice %158 {offsets = [0, 256], sizes = [8, 128], strides = [1, 1]} : vector<8x384xf32> to vector<8x128xf32>
    %164 = arith.mulf %162, %146 : vector<8x128xf32>
    %165 = arith.mulf %161, %160 : vector<8x128xf32>
    %166 = arith.addf %164, %165 : vector<8x128xf32>
    %167 = math.tanh %166 : vector<8x128xf32>
    %168 = arith.mulf %163, %167 : vector<8x128xf32>
    %c0_25 = arith.constant 0 : index
    %c0_26 = arith.constant 0 : index
    %169 = vector.load %arg4[%c0_25, %c0_26] : memref<128x128xf32, #tpu.memory_space<vmem>>, vector<128x128xf32>
    %cst_27 = arith.constant dense<0.000000e+00> : vector<8x128xf32>
    %170 = tpu.matmul %168, %169, %cst_27 {dimension_numbers = #tpu.dot_dimension_numbers<[1], [0], [0], [1], [0, 0, 1, 1], [], []>} : vector<8x128xf32>, vector<128x128xf32>, vector<8x128xf32> -> vector<8x128xf32>
    %c0_28 = arith.constant 0 : index
    %c0_29 = arith.constant 0 : index
    %171 = vector.load %arg5[%c0_28, %c0_29] : memref<1x128xf32, #tpu.memory_space<vmem>>, vector<1x128xf32>
    %172 = vector.broadcast %171 : vector<1x128xf32> to vector<8x128xf32>
    %173 = arith.addf %170, %172 : vector<8x128xf32>
    %cst_30 = arith.constant 0.000000e+00 : f32
    %174 = vector.broadcast %cst_30 : f32 to vector<8x128xf32>
    %175 = arith.maximumf %173, %174 : vector<8x128xf32>
    %c0_31 = arith.constant 0 : index
    %c0_32 = arith.constant 0 : index
    %176 = vector.load %arg6[%c0_31, %c0_32] : memref<128x64xf32, #tpu.memory_space<vmem>>, vector<128x64xf32>
    %cst_33 = arith.constant dense<0.000000e+00> : vector<8x64xf32>
    %177 = tpu.matmul %175, %176, %cst_33 {dimension_numbers = #tpu.dot_dimension_numbers<[1], [0], [0], [1], [0, 0, 1, 1], [], []>} : vector<8x128xf32>, vector<128x64xf32>, vector<8x64xf32> -> vector<8x64xf32>
    %c0_34 = arith.constant 0 : index
    %c0_35 = arith.constant 0 : index
    %178 = vector.load %arg7[%c0_34, %c0_35] : memref<1x64xf32, #tpu.memory_space<vmem>>, vector<1x64xf32>
    %179 = vector.broadcast %178 : vector<1x64xf32> to vector<8x64xf32>
    %180 = arith.addf %177, %179 : vector<8x64xf32>
    %cst_36 = arith.constant 0.000000e+00 : f32
    %181 = vector.broadcast %cst_36 : f32 to vector<8x64xf32>
    %182 = arith.maximumf %180, %181 : vector<8x64xf32>
    %c0_37 = arith.constant 0 : index
    %c0_38 = arith.constant 0 : index
    %183 = vector.load %arg8[%c0_37, %c0_38] : memref<64x128xf32, #tpu.memory_space<vmem>>, vector<64x128xf32>
    %cst_39 = arith.constant dense<0.000000e+00> : vector<8x128xf32>
    %184 = tpu.matmul %182, %183, %cst_39 {dimension_numbers = #tpu.dot_dimension_numbers<[1], [0], [0], [1], [0, 0, 1, 1], [], []>} : vector<8x64xf32>, vector<64x128xf32>, vector<8x128xf32> -> vector<8x128xf32>
    %c0_40 = arith.constant 0 : index
    %c0_41 = arith.constant 0 : index
    %185 = vector.load %arg9[%c0_40, %c0_41] : memref<1x128xf32, #tpu.memory_space<vmem>>, vector<1x128xf32>
    %186 = vector.broadcast %185 : vector<1x128xf32> to vector<8x128xf32>
    %187 = arith.addf %184, %186 : vector<8x128xf32>
    %cst_42 = arith.constant dense<0xFF800000> : vector<8xf32>
    %188 = vector.multi_reduction <maximumf>, %187, %cst_42 [1] : vector<8x128xf32> to vector<8xf32>
    %189 = vector.shape_cast %188 : vector<8xf32> to vector<8x1xf32>
    %190 = vector.broadcast %189 : vector<8x1xf32> to vector<8x128xf32>
    %191 = arith.subf %187, %190 : vector<8x128xf32>
    %192 = math.exp %191 : vector<8x128xf32>
    %cst_43 = arith.constant dense<0.000000e+00> : vector<8xf32>
    %193 = vector.multi_reduction <add>, %192, %cst_43 [1] : vector<8x128xf32> to vector<8xf32>
    %194 = vector.shape_cast %193 : vector<8xf32> to vector<8x1xf32>
    %195 = vector.broadcast %194 : vector<8x1xf32> to vector<8x128xf32>
    %196 = arith.divf %192, %195 : vector<8x128xf32>
    %c0_44 = arith.constant 0 : index
    %c0_45 = arith.constant 0 : index
    %197 = vector.load %arg10[%c0_44, %c0_45] : memref<8x128xf32, #tpu.memory_space<vmem>>, vector<8x128xf32>
    tpu.vector_store %arg10[%c0_44, %c0_45], %196 {strides = array<i32>} : memref<8x128xf32, #tpu.memory_space<vmem>>, vector<8x128xf32>,
    return
  }
}

</mosaic_0001>

<bundles_post_ra>
// kernel: tpu_custom_call.1
= control target key start
LH: loop header
LB: loop body
LE: loop exit
PB: predicated region body
PF: predicated region fallthrough
CT: control target
= control target key end

     0   :  { %15 = vsyncpa [#allocation3], 0  ;;  %s2626_s0 = inlined_call_operand.vmem [shape: bf16[64,6], index: 0, kind: input, shape index: {}]   ;;  %s2627_s1 = inlined_call_operand.vmem [shape: bf16[6,512], index: 1, kind: input, shape index: {}]   ;;  %s2628_s2 = inlined_call_operand.vmem [shape: f32[1,512], index: 2, kind: input, shape index: {}]   ;;  %s2629_s3 = inlined_call_operand.hbm [shape: bf16[128,512], index: 3, kind: input, shape index: {}]   ;;  %s2630_s4 = inlined_call_operand.vmem [shape: f32[128,128], index: 4, kind: input, shape index: {}]   ;;  %s2631_s5 = inlined_call_operand.vmem [shape: f32[1,128], index: 5, kind: input, shape index: {}]   ;;  %s2632_s6 = inlined_call_operand.vmem [shape: f32[128,64], index: 6, kind: input, shape index: {}]   ;;  %s2633_s7 = inlined_call_operand.vmem [shape: f32[1,64], index: 7, kind: input, shape index: {}]   ;;  %s2634_s8 = inlined_call_operand.vmem [shape: f32[64,128], index: 8, kind: input, shape index: {}]   ;;  %s2635_s9 = inlined_call_operand.vmem [shape: f32[1,128], index: 9, kind: input, shape index: {}]   ;;  %s2636_s10 = inlined_call_operand.hbm [shape: f32[8,128], index: 10, kind: output, shape index: {}]  }
   0x1   :  { %16 = vsyncpa [#allocation4], 0  ;;  %s27_s15 = sshll.u32 %s2629_s3, 4  ;;  %s1935_s16 = smov [#allocation2]   ;;  %s28_s15 = int_to_ptr.hbm [resolvable:$true] %s27_s15 }
   0x2   :  { %s29_s17 = sshll.u32 %s1935_s16, 4  ;;  %s1936_s18 = smov 256   ;;  %s30_s17 = int_to_ptr.vmem [resolvable:$true] %s29_s17 }
   0x3   :  { %s1937_s19 = smov 16  }
   0x4   :  { %35 = dma.hbm_to_vmem [thread:$0]  %s28_s15, 4096, %s30_s17, [#allocation3], %s1936_s18, %s1936_s18, %s1937_s19  }
   0x5   :  { %1931 = dma.done.wait [#allocation3], 4096  }
   0x6   :  { %1932 = vsyncadd [#allocation3], 4294963200  ;;  %v61_v0 = vld [vmem:[%s2627_s1] sm:$0x77]  ;;  %v62_v1 = vld [vmem:[%s2627_s1 + $0x8] sm:$0x77] }
   0x7   :  { %v95_v2 = vunpack.c.l.b16 %v61_v0  ;;  %v96_v3 = vunpack.c.h.b16 %v61_v0  ;;  %v97_v4 = vunpack.c.l.b16 %v62_v1  ;;  %v98_v5 = vunpack.c.h.b16 %v62_v1  ;;  %v1668_v6 = vld [vmem:[#allocation2 + $0xe0] sm:$0xf]  ;;  %v1741_v7 = vld [vmem:[#allocation2 + $0xec] sm:$0xf0]  ;;  %v1739_v8 = vld [vmem:[#allocation2 + $0xe4] sm:$0xf] }
   0x8   :  { %vm116_vm0 = vcmask 1042432   ;;  %v1670_v9 = vld [vmem:[#allocation2 + $0xf0] sm:$0xf0]  ;;  %v1707_v14 = vld [vmem:[%s2626_s0] sm:$0xff]  ;;  %v1676_v15 = vld [vmem:[#allocation2 + $0xe8] sm:$0xf]  ;;  %v2007_v18 = vor.u32 %v1741_v7, %v1668_v6 }
   0x9   :  { %v99_v10 = vpack.c.b16 %v95_v2, %v95_v2  ;;  %v100_v11 = vpack.c.b16 %v96_v3, %v96_v3  ;;  %v101_v12 = vpack.c.b16 %v97_v4, %v97_v4  ;;  %v102_v13 = vpack.c.b16 %v98_v5, %v98_v5  ;;  %v1742_v16 = vld [vmem:[#allocation2 + $0xf4] sm:$0xf0]  ;;  %v1652_v17 = vld [vmem:[#allocation2 + $0xc0] sm:$0xf]  ;;  %v1737_v20 = vld [vmem:[#allocation2 + $0xcc] sm:$0xf0] }
   0xa   :  { %v2009_v19 = vor.u32 %v1739_v8, %v1670_v9  ;;  %v1735_v21 = vld [vmem:[#allocation2 + $0xc4] sm:$0xf]  ;;  %v1654_v22 = vld [vmem:[#allocation2 + $0xd0] sm:$0xf0]  ;;  %v1740_v27 = vld [vmem:[#allocation2 + $0xec] sm:$0xf]  ;;  %v2015_v29 = vor.u32 %v1742_v16, %v1676_v15  ;;  %v2021_v33 = vor.u32 %v1737_v20, %v1652_v17 }
   0xb   :  { %v118_v23 = vsel %vm116_vm0, %v99_v10, 0  ;;  %v121_v24 = vsel %vm116_vm0, %v100_v11, 0  ;;  %v124_v25 = vsel %vm116_vm0, %v101_v12, 0  ;;  %v127_v26 = vsel %vm116_vm0, %v102_v13, 0  ;;  %v1678_v28 = vld [vmem:[#allocation2 + $0xf8] sm:$0xf0] }
   0xc   :  { %136 = vmatpush.bf16.msra.mxu0 %v118_v23  ;;  %165 = vmatpush.bf16.msra.mxu1 %v121_v24  ;;  %vm103_vm1 = vcmask 48128   ;;  %v1660_v30 = vld [vmem:[#allocation2 + $0xc8] sm:$0xf]  ;;  %v1738_v31 = vld [vmem:[#allocation2 + $0xd4] sm:$0xf0]  ;;  %v2017_v32 = vor.u32 %v1740_v27, %v1678_v28  ;;  %v2023_v34 = vor.u32 %v1735_v21, %v1654_v22  ;;  %s1512_s21 = sshll.u32 %s2636_s10, 4  ;;  %s1513_s21 = int_to_ptr.hbm [resolvable:$true] %s1512_s21 }
   0xd   :  { %194 = vmatpush.bf16.msra.mxu2 %v124_v25  ;;  %223 = vmatpush.bf16.msra.mxu3 %v127_v26  ;;  %v1636_v35 = vld [vmem:[#allocation2 + $0xa0] sm:$0xf]  ;;  %v1733_v36 = vld [vmem:[#allocation2 + $0xac] sm:$0xf0]  ;;  %v1736_v37 = vld [vmem:[#allocation2 + $0xcc] sm:$0xf]  ;;  %v2030_v41 = vor.u32 %v1738_v31, %v1660_v30 }
   0xe   :  { %v1731_v38 = vld [vmem:[#allocation2 + $0xa4] sm:$0xf]  ;;  %v1638_v39 = vld [vmem:[#allocation2 + $0xb0] sm:$0xf0]  ;;  %v1662_v40 = vld [vmem:[#allocation2 + $0xd8] sm:$0xf0]  ;;  %v2037_v45 = vor.u32 %v1733_v36, %v1636_v35 }
   0xf   :  { %1538 = vmatmul.msk.bf16.vlgmr.msra.gmra.mxu0 %vm103_vm1, %v1707_v14  ;;  %1542 = vmatmul.msk.bf16.vlgmr.msra.gmra.mxu1 %vm103_vm1, %v1707_v14  ;;  %v1644_v42 = vld [vmem:[#allocation2 + $0xa8] sm:$0xf]  ;;  %v1734_v43 = vld [vmem:[#allocation2 + $0xb4] sm:$0xf0]  ;;  %v2033_v44 = vor.u32 %v1736_v37, %v1662_v40  ;;  %v2039_v46 = vor.u32 %v1731_v38, %v1638_v39  ;;  %v1620_v47 = vld [vmem:[#allocation2 + $0x80] sm:$0xf] }
  0x10   :  { %437 = vmatpush.bf16.msrb.mxu0 %v2007_v18  ;;  %450 = vmatpush.bf16.msrb.mxu1 %v2009_v19  ;;  %v1732_v48 = vld [vmem:[#allocation2 + $0xac] sm:$0xf]  ;;  %v1646_v49 = vld [vmem:[#allocation2 + $0xb8] sm:$0xf0]  ;;  %v1729_v50 = vld [vmem:[#allocation2 + $0x8c] sm:$0xf0]  ;;  %v2042_v53 = vor.u32 %v1734_v43, %v1644_v42 }
  0x11   :  { %1546 = vmatmul.msk.bf16.vlgmr.msra.gmra.mxu2 %vm103_vm1, %v1707_v14  ;;  %1550 = vmatmul.msk.bf16.vlgmr.msra.gmra.mxu3 %vm103_vm1, %v1707_v14  ;;  %v1727_v51 = vld [vmem:[#allocation2 + $0x84] sm:$0xf]  ;;  %v1622_v52 = vld [vmem:[#allocation2 + $0x90] sm:$0xf0]  ;;  %v1628_v54 = vld [vmem:[#allocation2 + $0x88] sm:$0xf]  ;;  %v2045_v56 = vor.u32 %v1732_v48, %v1646_v49  ;;  %v2049_v57 = vor.u32 %v1729_v50, %v1620_v47 }
  0x12   :  { %463 = vmatpush.bf16.msrb.mxu2 %v2015_v29  ;;  %476 = vmatpush.bf16.msrb.mxu3 %v2017_v32  ;;  %v1730_v55 = vld [vmem:[#allocation2 + $0x94] sm:$0xf0]  ;;  %v2051_v58 = vor.u32 %v1727_v51, %v1622_v52  ;;  %v1604_v59 = vld [vmem:[#allocation2 + $0x60] sm:$0xf]  ;;  %v1728_v60 = vld [vmem:[#allocation2 + $0x8c] sm:$0xf] }
  0x13   :  { %v1630_v61 = vld [vmem:[#allocation2 + $0x98] sm:$0xf0]  ;;  %v1725_v62 = vld [vmem:[#allocation2 + $0x6c] sm:$0xf0]  ;;  %v1723_v63 = vld [vmem:[#allocation2 + $0x64] sm:$0xf]  ;;  %v2057_v2 = vor.u32 %v1730_v55, %v1628_v54 }
  0x14   :  { %438 = vmatpush.bf16.msrb.mxu0 %v2021_v33  ;;  %451 = vmatpush.bf16.msrb.mxu1 %v2023_v34  ;;  %v1606_v0 = vld [vmem:[#allocation2 + $0x70] sm:$0xf0]  ;;  %v1708_v1 = vld [vmem:[%s2626_s0 + $0x8] sm:$0xff]  ;;  %v1726_v4 = vld [vmem:[#allocation2 + $0x74] sm:$0xf0]  ;;  %v2060_v5 = vor.u32 %v1728_v60, %v1630_v61  ;;  %v2064_v6 = vor.u32 %v1725_v62, %v1604_v59 }
  0x15   :  { %v1612_v3 = vld [vmem:[#allocation2 + $0x68] sm:$0xf]  ;;  %v2066_v7 = vor.u32 %v1723_v63, %v1606_v0  ;;  %v1588_v8 = vld [vmem:[#allocation2 + $0x40] sm:$0xf]  ;;  %v1724_v9 = vld [vmem:[#allocation2 + $0x6c] sm:$0xf] }
  0x16   :  { %464 = vmatpush.bf16.msrb.mxu2 %v2030_v41  ;;  %477 = vmatpush.bf16.msrb.mxu3 %v2033_v44  ;;  %v1614_v10 = vld [vmem:[#allocation2 + $0x78] sm:$0xf0]  ;;  %v1721_v11 = vld [vmem:[#allocation2 + $0x4c] sm:$0xf0]  ;;  %v1719_v12 = vld [vmem:[#allocation2 + $0x44] sm:$0xf]  ;;  %v2069_v14 = vor.u32 %v1726_v4, %v1612_v3 }
  0x17   :  { %v1590_v13 = vld [vmem:[#allocation2 + $0x50] sm:$0xf0]  ;;  %v2072_v15 = vor.u32 %v1724_v9, %v1614_v10  ;;  %v2076_v16 = vor.u32 %v1721_v11, %v1588_v8  ;;  %v1596_v20 = vld [vmem:[#allocation2 + $0x48] sm:$0xf]  ;;  %v1722_v21 = vld [vmem:[#allocation2 + $0x54] sm:$0xf0] }
  0x18   :  { %439 = vmatpush.bf16.msrb.mxu0 %v2037_v45  ;;  %452 = vmatpush.bf16.msrb.mxu1 %v2039_v46  ;;  %v2078_v17 = vor.u32 %v1719_v12, %v1590_v13  ;;  %v1572_v22 = vld [vmem:[#allocation2 + $0x20] sm:$0xf]  ;;  %v1717_v23 = vld [vmem:[#allocation2 + $0x2c] sm:$0xf0]  ;;  %v1715_v24 = vld [vmem:[#allocation2 + $0x24] sm:$0xf]  ;;  %v2085_v25 = vor.u32 %v1722_v21, %v1596_v20 }
  0x19   :  { %v1574_v26 = vld [vmem:[#allocation2 + $0x30] sm:$0xf0]  ;;  %v1580_v27 = vld [vmem:[#allocation2 + $0x28] sm:$0xf]  ;;  %v1718_v28 = vld [vmem:[#allocation2 + $0x34] sm:$0xf0]  ;;  %v2090_v30 = vor.u32 %v1717_v23, %v1572_v22 }
  0x1a   :  { %465 = vmatpush.bf16.msrb.mxu2 %v2042_v53  ;;  %478 = vmatpush.bf16.msrb.mxu3 %v2045_v56  ;;  %v2092_v31 = vor.u32 %v1715_v24, %v1574_v26  ;;  %v1720_v35 = vld [vmem:[#allocation2 + $0x4c] sm:$0xf]  ;;  %v1598_v36 = vld [vmem:[#allocation2 + $0x58] sm:$0xf0]  ;;  %v1556_v37 = vld [vmem:[#allocation2] sm:$0xf]  ;;  %v2097_v48 = vor.u32 %v1718_v28, %v1580_v27 }
  0x1b   :  { %v2094_v38 = vor.u32 %v1720_v35, %v1598_v36  ;;  %v1713_v39 = vld [vmem:[#allocation2 + $0xc] sm:$0xf0]  ;;  %v1711_v40 = vld [vmem:[#allocation2 + $0x4] sm:$0xf]  ;;  %v1558_v42 = vld [vmem:[#allocation2 + $0x10] sm:$0xf0] }
  0x1c   :  { %440 = vmatpush.bf16.msrb.mxu0 %v2049_v57  ;;  %453 = vmatpush.bf16.msrb.mxu1 %v2051_v58  ;;  %v1716_v43 = vld [vmem:[#allocation2 + $0x2c] sm:$0xf]  ;;  %v1582_v47 = vld [vmem:[#allocation2 + $0x38] sm:$0xf0]  ;;  %v1564_v50 = vld [vmem:[#allocation2 + $0x8] sm:$0xf]  ;;  %v2104_v51 = vor.u32 %v1713_v39, %v1556_v37  ;;  %v2106_v52 = vor.u32 %v1711_v40, %v1558_v42 }
  0x1d   :  { %v2100_v49 = vor.u32 %v1716_v43, %v1582_v47  ;;  %v1714_v54 = vld [vmem:[#allocation2 + $0x14] sm:$0xf0]  ;;  %v1712_v55 = vld [vmem:[#allocation2 + $0xc] sm:$0xf]  ;;  %v1566_v59 = vld [vmem:[#allocation2 + $0x18] sm:$0xf0] }
  0x1e   :  { %466 = vmatpush.bf16.msrb.mxu2 %v2057_v2  ;;  %479 = vmatpush.bf16.msrb.mxu3 %v2060_v5  ;;  %v2110_v60 = vor.u32 %v1714_v54, %v1564_v50  ;;  %v2112_v61 = vor.u32 %v1712_v55, %v1566_v59  ;;  %v1709_v62 = vld [vmem:[%s2626_s0 + $0x10] sm:$0xff]  ;;  %v1710_v63 = vld [vmem:[%s2626_s0 + $0x18] sm:$0xff]  ;;  %v1938_v0 = vmov 0   ;;  %v63_v4 = vld [vmem:[%s2628_s2] sm:$0xf] }
  0x1f   :  { %1539 = vmatmul.msk.bf16.gmra.mxu0 %vm103_vm1, %v1708_v1  ;;  %1543 = vmatmul.msk.bf16.gmra.mxu1 %vm103_vm1, %v1708_v1  ;;  %v65_v8 = vperm.slane %v63_v4, 0  ;;  %v66_v9 = vperm.slane %v63_v4, 1  ;;  %v2207_v22 = vperm.slane %v63_v4, 3  ;;  %v67_v23 = vperm.slane %v63_v4, 2 }
  0x20   :  { %441 = vmatpush.bf16.msrb.mxu0 %v2064_v6  ;;  %454 = vmatpush.bf16.msrb.mxu1 %v2066_v7 }
  0x21   :  { %1547 = vmatmul.msk.bf16.gmra.mxu2 %vm103_vm1, %v1708_v1  ;;  %1551 = vmatmul.msk.bf16.gmra.mxu3 %vm103_vm1, %v1708_v1 }
  0x22   :  { %467 = vmatpush.bf16.msrb.mxu2 %v2069_v14  ;;  %480 = vmatpush.bf16.msrb.mxu3 %v2072_v15 }
  0x24   :  { %442 = vmatpush.bf16.msrb.mxu0 %v2076_v16  ;;  %455 = vmatpush.bf16.msrb.mxu1 %v2078_v17 }
  0x26   :  { %468 = vmatpush.bf16.msrb.mxu2 %v2085_v25  ;;  %481 = vmatpush.bf16.msrb.mxu3 %v2094_v38 }
  0x28   :  { %443 = vmatpush.bf16.msrb.mxu0 %v2090_v30  ;;  %456 = vmatpush.bf16.msrb.mxu1 %v2092_v31 }
  0x2a   :  { %469 = vmatpush.bf16.msrb.mxu2 %v2097_v48  ;;  %482 = vmatpush.bf16.msrb.mxu3 %v2100_v49 }
  0x2c   :  { %444 = vmatpush.bf16.msrb.mxu0 %v2104_v51  ;;  %457 = vmatpush.bf16.msrb.mxu1 %v2106_v52 }
  0x2e   :  { %470 = vmatpush.bf16.msrb.mxu2 %v2110_v60  ;;  %483 = vmatpush.bf16.msrb.mxu3 %v2112_v61 }
  0x2f   :  { %1540 = vmatmul.msk.bf16.gmra.mxu0 %vm103_vm1, %v1709_v62  ;;  %1544 = vmatmul.msk.bf16.gmra.mxu1 %vm103_vm1, %v1709_v62 }
  0x30   :  { %553 = vmatpush.bf16.msra.mxu0 %v2007_v18  ;;  %566 = vmatpush.bf16.msra.mxu1 %v2009_v19 }
  0x31   :  { %1548 = vmatmul.msk.bf16.gmra.mxu2 %vm103_vm1, %v1709_v62  ;;  %1552 = vmatmul.msk.bf16.gmra.mxu3 %vm103_vm1, %v1709_v62 }
  0x32   :  { %579 = vmatpush.bf16.msra.mxu2 %v2015_v29  ;;  %592 = vmatpush.bf16.msra.mxu3 %v2017_v32 }
  0x34   :  { %554 = vmatpush.bf16.msra.mxu0 %v2021_v33  ;;  %567 = vmatpush.bf16.msra.mxu1 %v2023_v34 }
  0x36   :  { %580 = vmatpush.bf16.msra.mxu2 %v2030_v41  ;;  %593 = vmatpush.bf16.msra.mxu3 %v2033_v44 }
  0x38   :  { %555 = vmatpush.bf16.msra.mxu0 %v2037_v45  ;;  %568 = vmatpush.bf16.msra.mxu1 %v2039_v46 }
  0x3a   :  { %581 = vmatpush.bf16.msra.mxu2 %v2042_v53  ;;  %594 = vmatpush.bf16.msra.mxu3 %v2045_v56 }
  0x3c   :  { %556 = vmatpush.bf16.msra.mxu0 %v2049_v57  ;;  %569 = vmatpush.bf16.msra.mxu1 %v2051_v58 }
  0x3e   :  { %582 = vmatpush.bf16.msra.mxu2 %v2057_v2  ;;  %595 = vmatpush.bf16.msra.mxu3 %v2060_v5 }
  0x3f   :  { %1541 = vmatmul.msk.bf16.gmra.mxu0 %vm103_vm1, %v1710_v63  ;;  %1545 = vmatmul.msk.bf16.gmra.mxu1 %vm103_vm1, %v1710_v63 }
  0x40   :  { %557 = vmatpush.bf16.msra.mxu0 %v2064_v6  ;;  %570 = vmatpush.bf16.msra.mxu1 %v2066_v7 }
  0x41   :  { %1549 = vmatmul.msk.bf16.gmra.mxu2 %vm103_vm1, %v1710_v63  ;;  %1553 = vmatmul.msk.bf16.gmra.mxu3 %vm103_vm1, %v1710_v63 }
  0x42   :  { %583 = vmatpush.bf16.msra.mxu2 %v2069_v14  ;;  %596 = vmatpush.bf16.msra.mxu3 %v2072_v15 }
  0x44   :  { %558 = vmatpush.bf16.msra.mxu0 %v2076_v16  ;;  %571 = vmatpush.bf16.msra.mxu1 %v2078_v17 }
  0x46   :  { %584 = vmatpush.bf16.msra.mxu2 %v2085_v25  ;;  %597 = vmatpush.bf16.msra.mxu3 %v2094_v38 }
  0x48   :  { %559 = vmatpush.bf16.msra.mxu0 %v2090_v30  ;;  %572 = vmatpush.bf16.msra.mxu1 %v2092_v31 }
  0x4a   :  { %585 = vmatpush.bf16.msra.mxu2 %v2097_v48  ;;  %598 = vmatpush.bf16.msra.mxu3 %v2100_v49 }
  0x4c   :  { %560 = vmatpush.bf16.msra.mxu0 %v2104_v51  ;;  %573 = vmatpush.bf16.msra.mxu1 %v2106_v52 }
  0x4e   :  { %586 = vmatpush.bf16.msra.mxu2 %v2110_v60  ;;  %599 = vmatpush.bf16.msra.mxu3 %v2112_v61 }
  0x4f   :  { %445 = vmatmul.bf16.vlgmr.msrb.gmra.mxu0 %v1938_v0  ;;  %458 = vmatmul.bf16.vlgmr.msrb.gmra.mxu1 %v1938_v0 }
  0x50   :  { %669 = vmatpush.bf16.msrb.mxu0 %v2007_v18  ;;  %682 = vmatpush.bf16.msrb.mxu1 %v2009_v19 }
  0x51   :  { %471 = vmatmul.bf16.vlgmr.msrb.gmra.mxu2 %v1938_v0  ;;  %484 = vmatmul.bf16.vlgmr.msrb.gmra.mxu3 %v1938_v0 }
  0x52   :  { %695 = vmatpush.bf16.msrb.mxu2 %v2015_v29  ;;  %708 = vmatpush.bf16.msrb.mxu3 %v2017_v32 }
  0x54   :  { %670 = vmatpush.bf16.msrb.mxu0 %v2021_v33  ;;  %683 = vmatpush.bf16.msrb.mxu1 %v2023_v34 }
  0x56   :  { %696 = vmatpush.bf16.msrb.mxu2 %v2030_v41  ;;  %709 = vmatpush.bf16.msrb.mxu3 %v2033_v44 }
  0x58   :  { %671 = vmatpush.bf16.msrb.mxu0 %v2037_v45  ;;  %684 = vmatpush.bf16.msrb.mxu1 %v2039_v46 }
  0x5a   :  { %697 = vmatpush.bf16.msrb.mxu2 %v2042_v53  ;;  %710 = vmatpush.bf16.msrb.mxu3 %v2045_v56 }
  0x5c   :  { %672 = vmatpush.bf16.msrb.mxu0 %v2049_v57  ;;  %685 = vmatpush.bf16.msrb.mxu1 %v2051_v58 }
  0x5e   :  { %698 = vmatpush.bf16.msrb.mxu2 %v2057_v2  ;;  %711 = vmatpush.bf16.msrb.mxu3 %v2060_v5 }
  0x60   :  { %673 = vmatpush.bf16.msrb.mxu0 %v2064_v6  ;;  %686 = vmatpush.bf16.msrb.mxu1 %v2066_v7 }
  0x62   :  { %699 = vmatpush.bf16.msrb.mxu2 %v2069_v14  ;;  %712 = vmatpush.bf16.msrb.mxu3 %v2072_v15 }
  0x64   :  { %674 = vmatpush.bf16.msrb.mxu0 %v2076_v16  ;;  %687 = vmatpush.bf16.msrb.mxu1 %v2078_v17 }
  0x66   :  { %700 = vmatpush.bf16.msrb.mxu2 %v2085_v25  ;;  %713 = vmatpush.bf16.msrb.mxu3 %v2094_v38 }
  0x68   :  { %675 = vmatpush.bf16.msrb.mxu0 %v2090_v30  ;;  %688 = vmatpush.bf16.msrb.mxu1 %v2092_v31 }
  0x6a   :  { %701 = vmatpush.bf16.msrb.mxu2 %v2097_v48  ;;  %714 = vmatpush.bf16.msrb.mxu3 %v2100_v49 }
  0x6c   :  { %676 = vmatpush.bf16.msrb.mxu0 %v2104_v51  ;;  %689 = vmatpush.bf16.msrb.mxu1 %v2106_v52 }
  0x6e   :  { %702 = vmatpush.bf16.msrb.mxu2 %v2110_v60  ;;  %715 = vmatpush.bf16.msrb.mxu3 %v2112_v61 }
  0x8c   :  { %v138_v1 = vpop.f32.mrf.mxu0  ;;  %v167_v3 = vpop.f32.mrf.mxu1 }
  0x94   :  { %v2199_v10 = vpop.f32.mrf.mxu2  ;;  %v2201_v11 = vpop.f32.mrf.mxu3 }
  0x95   :  { %v140_v12 = vpop.f32.mrf.mxu0  ;;  %v169_v13 = vpop.f32.mrf.mxu1 }
  0x96   :  { %v2203_v20 = vadd.f32 %v140_v12, %v65_v8  ;;  %v2205_v21 = vadd.f32 %v169_v13, %v66_v9 }
  0x9c   :  { %v198_v24 = vpop.f32.mrf.mxu2  ;;  %v227_v26 = vpop.f32.mrf.mxu3 }
  0x9d   :  { %v2209_v27 = vadd.f32 %v198_v24, %v67_v23  ;;  %v2212_v28 = vadd.f32 %v227_v26, %v2207_v22  ;;  %v143_v35 = vpop.f32.mrf.mxu0  ;;  %v172_v36 = vpop.f32.mrf.mxu1 }
  0x9e   :  { %v2214_v37 = vadd.f32 %v143_v35, %v65_v8  ;;  %v2216_v39 = vadd.f32 %v172_v36, %v66_v9 }
  0xa4   :  { %v201_v40 = vpop.f32.mrf.mxu2  ;;  %v230_v42 = vpop.f32.mrf.mxu3 }
  0xa5   :  { %v2218_v43 = vadd.f32 %v201_v40, %v67_v23  ;;  %v2221_v47 = vadd.f32 %v230_v42, %v2207_v22  ;;  %v145_v50 = vpop.f32.mrf.mxu0  ;;  %v174_v54 = vpop.f32.mrf.mxu1 }
  0xa6   :  { %v2223_v55 = vadd.f32 %v145_v50, %v65_v8  ;;  %v2225_v59 = vadd.f32 %v174_v54, %v66_v9 }
  0xa7   :  { %2637 = vst [vmem:[#allocation8_spill] sm:$0xff] %v2218_v43 }
  0xa8   :  { %2638 = vst [vmem:[#allocation9_spill] sm:$0xff] %v2221_v47 }
  0xa9   :  { %2639 = vst [vmem:[#allocation10_spill] sm:$0xff] %v2223_v55 }
  0xaa   :  { %2640 = vst [vmem:[#allocation11_spill] sm:$0xff] %v2225_v59 }
  0xac   :  { %v203_v62 = vpop.f32.mrf.mxu2  ;;  %v232_v63 = vpop.f32.mrf.mxu3 }
  0xad   :  { %v2227_v0 = vadd.f32 %v203_v62, %v67_v23  ;;  %v2230_v4 = vadd.f32 %v232_v63, %v2207_v22  ;;  %v148_v12 = vpop.f32.mrf.mxu0  ;;  %v177_v13 = vpop.f32.mrf.mxu1 }
  0xae   :  { %v2232_v24 = vadd.f32 %v148_v12, %v65_v8  ;;  %v2234_v26 = vadd.f32 %v177_v13, %v66_v9 }
  0xaf   :  { %2641 = vst [vmem:[#allocation12_spill] sm:$0xff] %v2227_v0 }
  0xb0   :  { %2642 = vst [vmem:[#allocation13_spill] sm:$0xff] %v2230_v4 }
  0xb1   :  { %2643 = vst [vmem:[#allocation14_spill] sm:$0xff] %v2232_v24 }
  0xb2   :  { %2644 = vst [vmem:[#allocation15_spill] sm:$0xff] %v2234_v26 }
  0xb4   :  { %v206_v35 = vpop.f32.mrf.mxu2  ;;  %v235_v36 = vpop.f32.mrf.mxu3 }
  0xb5   :  { %v2236_v40 = vadd.f32 %v206_v35, %v67_v23  ;;  %v2239_v42 = vadd.f32 %v235_v36, %v2207_v22  ;;  %v150_v50 = vpop.f32.mrf.mxu0  ;;  %v179_v54 = vpop.f32.mrf.mxu1 }
  0xb6   :  { %v2241_v62 = vadd.f32 %v150_v50, %v65_v8  ;;  %v2243_v0 = vadd.f32 %v179_v54, %v66_v9 }
  0xb7   :  { %2645 = vst [vmem:[#allocation16_spill] sm:$0xff] %v2236_v40 }
  0xb8   :  { %2646 = vst [vmem:[#allocation17_spill] sm:$0xff] %v2239_v42 }
  0xb9   :  { %2647 = vst [vmem:[#allocation18_spill] sm:$0xff] %v2241_v62 }
  0xba   :  { %2648 = vst [vmem:[#allocation19_spill] sm:$0xff] %v2243_v0 }
  0xbc   :  { %v208_v63 = vpop.f32.mrf.mxu2  ;;  %v237_v4 = vpop.f32.mrf.mxu3 }
  0xbd   :  { %v2245_v59 = vadd.f32 %v208_v63, %v67_v23  ;;  %v2248_v12 = vadd.f32 %v237_v4, %v2207_v22  ;;  %v153_v13 = vpop.f32.mrf.mxu0  ;;  %v182_v26 = vpop.f32.mrf.mxu1  ;;  %v139_v4 = vadd.f32 %v138_v1, %v65_v8 }
  0xbe   :  { %v2250_v35 = vadd.f32 %v153_v13, %v65_v8  ;;  %v2252_v40 = vadd.f32 %v182_v26, %v66_v9 }
  0xbf   :  { %2649 = vst [vmem:[#allocation20_spill] sm:$0xff] %v2245_v59 }
  0xc0   :  { %2650 = vst [vmem:[#allocation21_spill] sm:$0xff] %v2248_v12  ;;  %v168_v12 = vadd.f32 %v167_v3, %v66_v9 }
  0xc1   :  { %2651 = vst [vmem:[#allocation22_spill] sm:$0xff] %v2250_v35 }
  0xc2   :  { %2652 = vst [vmem:[#allocation23_spill] sm:$0xff] %v2252_v40 }
  0xc4   :  { %v211_v36 = vpop.f32.mrf.mxu2  ;;  %v240_v42 = vpop.f32.mrf.mxu3 }
  0xc5   :  { %v2254_v24 = vadd.f32 %v211_v36, %v67_v23  ;;  %v2257_v50 = vadd.f32 %v240_v42, %v2207_v22  ;;  %v155_v54 = vpop.f32.mrf.mxu0  ;;  %v184_v0 = vpop.f32.mrf.mxu1 }
  0xc6   :  { %v2259_v63 = vadd.f32 %v155_v54, %v65_v8  ;;  %v2261_v59 = vadd.f32 %v184_v0, %v66_v9  ;;  %v197_v54 = vadd.f32 %v2199_v10, %v67_v23  ;;  %v226_v10 = vadd.f32 %v2201_v11, %v2207_v22 }
  0xc7   :  { %2653 = vst [vmem:[#allocation24_spill] sm:$0xff] %v2254_v24 }
  0xc8   :  { %2654 = vst [vmem:[#allocation25_spill] sm:$0xff] %v2257_v50 }
  0xc9   :  { %2655 = vst [vmem:[#allocation26_spill] sm:$0xff] %v2259_v63 }
  0xca   :  { %2656 = vst [vmem:[#allocation27_spill] sm:$0xff] %v2261_v59 }
  0xcc   :  { %v213_v62 = vpop.f32.mrf.mxu2  ;;  %v242_v13 = vpop.f32.mrf.mxu3 }
  0xcd   :  { %v2263_v35 = vadd.f32 %v213_v62, %v67_v23  ;;  %v2266_v26 = vadd.f32 %v242_v13, %v2207_v22  ;;  %v446_v36 = vpop.f32.mrf.mxu0  ;;  %v459_v24 = vpop.f32.mrf.mxu1 }
  0xce   :  { %v447_v40 = vadd.f32 %v446_v36, %v139_v4  ;;  %v460_v42 = vadd.f32 %v459_v24, %v168_v12 }
  0xcf   :  { %2657 = vst [vmem:[#allocation28_spill] sm:$0xff] %v2263_v35 }
  0xd0   :  { %2658 = vst [vmem:[#allocation29_spill] sm:$0xff] %v2266_v26  ;;  %v1682_v50 = vmul.f32 -1.442695, %v447_v40  ;;  %v1683_v55 = vmul.f32 -1.442695, %v460_v42 }
  0xd2   :  { %1751 = vpow2.f32 %v1682_v50 }
  0xd3   :  { %1753 = vpow2.f32 %v1683_v55 }
  0xd4   :  { %v472_v0 = vpop.f32.mrf.mxu2  ;;  %v485_v1 = vpop.f32.mrf.mxu3 }
  0xd5   :  { %v473_v3 = vadd.f32 %v472_v0, %v197_v54  ;;  %v448_v8 = vpop.f32.mrf.mxu0  ;;  %v461_v9 = vpop.f32.mrf.mxu1  ;;  %v486_v50 = vadd.f32 %v485_v1, %v226_v10 }
  0xd7   :  { %v1684_v62 = vmul.f32 -1.442695, %v473_v3 }
  0xd8   :  { %v1752_v35 = vpop.eup %1751 }
  0xd9   :  { %v1754_v59 = vpop.eup %1753  ;;  %v498_v13 = vadd.f32 1.0, %v1752_v35  ;;  %1755 = vpow2.f32 %v1684_v62 }
  0xda   :  { %v499_v26 = vadd.f32 1.0, %v1754_v59 }
  0xdb   :  { %1757 = vrcp.f32 %v498_v13  ;;  %v512_v35 = vand.u32 2147483648, %v498_v13  ;;  %v510_v8 = vand.u32 2147483647, %v498_v13  ;;  %vm506_vm4 = vweird.f32 %v498_v13 }
  0xdc   :  { %1759 = vrcp.f32 %v499_v26  ;;  %v474_v24 = vpop.f32.mrf.mxu2  ;;  %v487_v40 = vpop.f32.mrf.mxu3  ;;  %v527_v59 = vand.u32 2147483648, %v499_v26  ;;  %v525_v62 = vand.u32 2147483647, %v499_v26  ;;  %vm521_vm5 = vweird.f32 %v499_v26 }
  0xdd   :  { %v513_v1 = vor.u32 1.1754944e-38, %v512_v35  ;;  %vm511_vm7 = vcmp.eq.f32.partialorder %v510_v8, 8.507059e+37 }
  0xde   :  { %vm526_vm9 = vcmp.eq.f32.partialorder %v525_v62, 8.507059e+37 }
  0xdf   :  { %v1756_v12 = vpop.eup %1755 }
  0xe0   :  { %v500_v23 = vadd.f32 1.0, %v1756_v12  ;;  %v528_v12 = vor.u32 1.1754944e-38, %v527_v59 }
  0xe1   :  { %v1758_v55 = vpop.eup %1757 }
  0xe2   :  { %v1760_v4 = vpop.eup %1759  ;;  %v502_v36 = vmul.f32 %v1758_v55, %v498_v13  ;;  %1761 = vrcp.f32 %v500_v23  ;;  %vm507_vm2 = vweird.f32 %v1758_v55  ;;  %v542_v13 = vand.u32 2147483648, %v500_v23 }
  0xe3   :  { %v517_v42 = vmul.f32 %v1760_v4, %v499_v26  ;;  %1763 = vtanh.f32 %v486_v50  ;;  %vm522_vm3 = vweird.f32 %v1760_v4  ;;  %vm508_vm6 = vmor %vm506_vm4, %vm507_vm2  ;;  %vm536_vm11 = vweird.f32 %v500_v23 }
  0xe4   :  { %v503_v54 = vsub.f32 1.0, %v502_v36  ;;  %vm523_vm8 = vmor %vm521_vm5, %vm522_vm3  ;;  %v543_v59 = vor.u32 1.1754944e-38, %v542_v13 }
  0xe5   :  { %v518_v0 = vsub.f32 1.0, %v517_v42 }
  0xe6   :  { %v504_v3 = vmul.f32 %v1758_v55, %v503_v54 }
  0xe7   :  { %v519_v9 = vmul.f32 %v1760_v4, %v518_v0 }
  0xe8   :  { %v1762_v24 = vpop.eup %1761  ;;  %v505_v11 = vadd.f32 %v1758_v55, %v504_v3 }
  0xe9   :  { %v532_v22 = vmul.f32 %v1762_v24, %v500_v23  ;;  %v520_v40 = vadd.f32 %v1760_v4, %v519_v9  ;;  %v1764_v50 = vpop.eup %1763  ;;  %vm537_vm10 = vweird.f32 %v1762_v24 }
  0xea   :  { %v509_v10 = vsel %vm508_vm6, %v1758_v55, %v505_v11  ;;  %v540_v55 = vand.u32 2147483647, %v500_v23  ;;  %vm538_vm12 = vmor %vm536_vm11, %vm537_vm10 }
  0xeb   :  { %v533_v36 = vsub.f32 1.0, %v532_v22  ;;  %v514_v42 = vsel %vm511_vm7, %v513_v1, %v509_v10  ;;  %v524_v54 = vsel %vm523_vm8, %v1760_v4, %v520_v40 }
  0xec   :  { %v529_v0 = vsel %vm526_vm9, %v528_v12, %v524_v54  ;;  %v548_v63 = vmul.f32 %v1764_v50, %v514_v42  ;;  %vm541_vm13 = vcmp.eq.f32.partialorder %v540_v55, 8.507059e+37 }
  0xed   :  { %v547_v47 = vmul.f32 0.0, %v529_v0  ;;  %v534_v43 = vmul.f32 %v1762_v24, %v533_v36 }
  0xef   :  { %v2271_v3 = vadd.f32 %v548_v63, %v547_v47  ;;  %v535_v26 = vadd.f32 %v1762_v24, %v534_v43 }
  0xf1   :  { %1765 = vtanh.f32 %v2271_v3  ;;  %v539_v35 = vsel %vm538_vm12, %v1762_v24, %v535_v26 }
  0xf2   :  { %v544_v4 = vsel %vm541_vm13, %v543_v59, %v539_v35 }
  0xf7   :  { %v1766_v8 = vpop.eup %1765 }
  0xf8   :  { %v551_v9 = vmul.f32 %v1766_v8, %v544_v4 }
  0xfa   :  { %v552_v62 = vpack.c.bf16 %v551_v9, %v551_v9 }
  0xfc   :  { %561 = vmatmul.bf16.vlgmr.msra.gmra.mxu0 %v552_v62  ;;  %574 = vmatmul.bf16.vlgmr.msra.gmra.mxu1 %v552_v62 }
  0xfd   :  { %587 = vmatmul.bf16.vlgmr.msra.gmra.mxu2 %v552_v62  ;;  %600 = vmatmul.bf16.vlgmr.msra.gmra.mxu3 %v552_v62 }
  0xfe   :  { %785 = vmatpush.bf16.msra.mxu0 %v2007_v18  ;;  %798 = vmatpush.bf16.msra.mxu1 %v2009_v19 }
  0xff   :  { %811 = vmatpush.bf16.msra.mxu2 %v2015_v29  ;;  %824 = vmatpush.bf16.msra.mxu3 %v2017_v32 }
 0x102   :  { %786 = vmatpush.bf16.msra.mxu0 %v2021_v33  ;;  %799 = vmatpush.bf16.msra.mxu1 %v2023_v34 }
 0x103   :  { %812 = vmatpush.bf16.msra.mxu2 %v2030_v41  ;;  %825 = vmatpush.bf16.msra.mxu3 %v2033_v44 }
 0x106   :  { %787 = vmatpush.bf16.msra.mxu0 %v2037_v45  ;;  %800 = vmatpush.bf16.msra.mxu1 %v2039_v46 }
 0x107   :  { %813 = vmatpush.bf16.msra.mxu2 %v2042_v53  ;;  %826 = vmatpush.bf16.msra.mxu3 %v2045_v56 }
 0x10a   :  { %788 = vmatpush.bf16.msra.mxu0 %v2049_v57  ;;  %801 = vmatpush.bf16.msra.mxu1 %v2051_v58 }
 0x10b   :  { %814 = vmatpush.bf16.msra.mxu2 %v2057_v2  ;;  %827 = vmatpush.bf16.msra.mxu3 %v2060_v5 }
 0x10e   :  { %789 = vmatpush.bf16.msra.mxu0 %v2064_v6  ;;  %802 = vmatpush.bf16.msra.mxu1 %v2066_v7 }
 0x10f   :  { %815 = vmatpush.bf16.msra.mxu2 %v2069_v14  ;;  %828 = vmatpush.bf16.msra.mxu3 %v2072_v15 }
 0x112   :  { %790 = vmatpush.bf16.msra.mxu0 %v2076_v16  ;;  %803 = vmatpush.bf16.msra.mxu1 %v2078_v17 }
 0x113   :  { %816 = vmatpush.bf16.msra.mxu2 %v2085_v25  ;;  %829 = vmatpush.bf16.msra.mxu3 %v2094_v38 }
 0x116   :  { %791 = vmatpush.bf16.msra.mxu0 %v2090_v30  ;;  %804 = vmatpush.bf16.msra.mxu1 %v2092_v31 }
 0x117   :  { %817 = vmatpush.bf16.msra.mxu2 %v2097_v48  ;;  %830 = vmatpush.bf16.msra.mxu3 %v2100_v49 }
 0x11a   :  { %792 = vmatpush.bf16.msra.mxu0 %v2104_v51  ;;  %805 = vmatpush.bf16.msra.mxu1 %v2106_v52 }
 0x11b   :  { %818 = vmatpush.bf16.msra.mxu2 %v2110_v60  ;;  %831 = vmatpush.bf16.msra.mxu3 %v2112_v61 }
 0x179   :  { %v562_v43 = vpop.f32.mrf.mxu0  ;;  %v575_v47 = vpop.f32.mrf.mxu1 }
 0x17a   :  { %v563_v63 = vadd.f32 %v562_v43, %v2203_v20  ;;  %v576_v23 = vadd.f32 %v575_v47, %v2205_v21 }
 0x17c   :  { %v1685_v24 = vmul.f32 -1.442695, %v563_v63  ;;  %v1686_v11 = vmul.f32 -1.442695, %v576_v23 }
 0x17e   :  { %1767 = vpow2.f32 %v1685_v24 }
 0x17f   :  { %1769 = vpow2.f32 %v1686_v11 }
 0x180   :  { %v588_v22 = vpop.f32.mrf.mxu2  ;;  %v601_v1 = vpop.f32.mrf.mxu3 }
 0x181   :  { %v589_v40 = vadd.f32 %v588_v22, %v2209_v27  ;;  %v564_v12 = vpop.f32.mrf.mxu0  ;;  %v577_v10 = vpop.f32.mrf.mxu1  ;;  %v602_v35 = vadd.f32 %v601_v1, %v2212_v28 }
 0x183   :  { %v1687_v50 = vmul.f32 -1.442695, %v589_v40 }
 0x184   :  { %v1768_v36 = vpop.eup %1767 }
 0x185   :  { %v1770_v42 = vpop.eup %1769  ;;  %v614_v54 = vadd.f32 1.0, %v1768_v36  ;;  %1771 = vpow2.f32 %v1687_v50 }
 0x186   :  { %v615_v0 = vadd.f32 1.0, %v1770_v42 }
 0x187   :  { %1773 = vrcp.f32 %v614_v54  ;;  %v628_v62 = vand.u32 2147483648, %v614_v54  ;;  %v626_v63 = vand.u32 2147483647, %v614_v54  ;;  %vm622_vm0 = vweird.f32 %v614_v54 }
 0x188   :  { %1775 = vrcp.f32 %v615_v0  ;;  %v590_v20 = vpop.f32.mrf.mxu2  ;;  %v603_v21 = vpop.f32.mrf.mxu3  ;;  %v643_v43 = vand.u32 2147483648, %v615_v0  ;;  %v641_v24 = vand.u32 2147483647, %v615_v0  ;;  %vm637_vm1 = vweird.f32 %v615_v0 }
 0x189   :  { %v629_v1 = vor.u32 1.1754944e-38, %v628_v62  ;;  %vm627_vm4 = vcmp.eq.f32.partialorder %v626_v63, 8.507059e+37 }
 0x18a   :  { %v644_v12 = vor.u32 1.1754944e-38, %v643_v43  ;;  %vm642_vm5 = vcmp.eq.f32.partialorder %v641_v24, 8.507059e+37 }
 0x18b   :  { %v1772_v26 = vpop.eup %1771 }
 0x18c   :  { %v616_v13 = vadd.f32 1.0, %v1772_v26 }
 0x18d   :  { %v1774_v55 = vpop.eup %1773 }
 0x18e   :  { %v1776_v59 = vpop.eup %1775  ;;  %v618_v8 = vmul.f32 %v1774_v55, %v614_v54  ;;  %1777 = vrcp.f32 %v616_v13  ;;  %vm623_vm14 = vweird.f32 %v1774_v55  ;;  %vm652_vm7 = vweird.f32 %v616_v13 }
 0x18f   :  { %v633_v27 = vmul.f32 %v1776_v59, %v615_v0  ;;  %1779 = vtanh.f32 %v602_v35  ;;  %vm638_vm15 = vweird.f32 %v1776_v59  ;;  %vm624_vm2 = vmor %vm622_vm0, %vm623_vm14 }
 0x190   :  { %v619_v4 = vsub.f32 1.0, %v618_v8  ;;  %vm639_vm3 = vmor %vm637_vm1, %vm638_vm15 }
 0x191   :  { %v634_v9 = vsub.f32 1.0, %v633_v27  ;;  %v658_v27 = vand.u32 2147483648, %v616_v13 }
 0x192   :  { %v620_v47 = vmul.f32 %v1774_v55, %v619_v4 }
 0x193   :  { %v635_v23 = vmul.f32 %v1776_v59, %v634_v9  ;;  %v659_v9 = vor.u32 1.1754944e-38, %v658_v27 }
 0x194   :  { %v1778_v11 = vpop.eup %1777  ;;  %v621_v22 = vadd.f32 %v1774_v55, %v620_v47 }
 0x195   :  { %v648_v28 = vmul.f32 %v1778_v11, %v616_v13  ;;  %v636_v40 = vadd.f32 %v1776_v59, %v635_v23  ;;  %v1780_v50 = vpop.eup %1779  ;;  %vm653_vm6 = vweird.f32 %v1778_v11 }
 0x196   :  { %v625_v10 = vsel %vm624_vm2, %v1774_v55, %v621_v22  ;;  %v656_v55 = vand.u32 2147483647, %v616_v13  ;;  %vm654_vm8 = vmor %vm652_vm7, %vm653_vm6 }
 0x197   :  { %v649_v36 = vsub.f32 1.0, %v648_v28  ;;  %v630_v42 = vsel %vm627_vm4, %v629_v1, %v625_v10  ;;  %v640_v20 = vsel %vm639_vm3, %v1776_v59, %v636_v40  ;;  %v2659_v1 = vld [vmem:[#allocation8_spill] sm:$0xff] }
 0x198   :  { %v645_v21 = vsel %vm642_vm5, %v644_v12, %v640_v20  ;;  %v664_v26 = vmul.f32 %v1780_v50, %v630_v42  ;;  %vm657_vm9 = vcmp.eq.f32.partialorder %v656_v55, 8.507059e+37 }
 0x199   :  { %v663_v35 = vmul.f32 %v645_v21, %v2271_v3  ;;  %v650_v8 = vmul.f32 %v1778_v11, %v649_v36 }
 0x19b   :  { %v2311_v54 = vadd.f32 %v664_v26, %v663_v35  ;;  %v651_v0 = vadd.f32 %v1778_v11, %v650_v8 }
 0x19d   :  { %1781 = vtanh.f32 %v2311_v54  ;;  %v655_v4 = vsel %vm654_vm8, %v1778_v11, %v651_v0  ;;  %v2660_v0 = vld [vmem:[#allocation9_spill] sm:$0xff] }
 0x19e   :  { %v660_v62 = vsel %vm657_vm9, %v659_v9, %v655_v4 }
 0x1a3   :  { %v1782_v59 = vpop.eup %1781 }
 0x1a4   :  { %v667_v43 = vmul.f32 %v1782_v59, %v660_v62 }
 0x1a6   :  { %v668_v47 = vpack.c.bf16 %v667_v43, %v667_v43 }
 0x1a8   :  { %677 = vmatmul.bf16.vlgmr.msrb.gmra.mxu0 %v668_v47  ;;  %690 = vmatmul.bf16.vlgmr.msrb.gmra.mxu1 %v668_v47 }
 0x1a9   :  { %703 = vmatmul.bf16.vlgmr.msrb.gmra.mxu2 %v668_v47  ;;  %716 = vmatmul.bf16.vlgmr.msrb.gmra.mxu3 %v668_v47 }
 0x1aa   :  { %901 = vmatpush.bf16.msrb.mxu0 %v2007_v18  ;;  %914 = vmatpush.bf16.msrb.mxu1 %v2009_v19 }
 0x1ab   :  { %927 = vmatpush.bf16.msrb.mxu2 %v2015_v29  ;;  %940 = vmatpush.bf16.msrb.mxu3 %v2017_v32 }
 0x1ae   :  { %902 = vmatpush.bf16.msrb.mxu0 %v2021_v33  ;;  %915 = vmatpush.bf16.msrb.mxu1 %v2023_v34 }
 0x1af   :  { %928 = vmatpush.bf16.msrb.mxu2 %v2030_v41  ;;  %941 = vmatpush.bf16.msrb.mxu3 %v2033_v44 }
 0x1b2   :  { %903 = vmatpush.bf16.msrb.mxu0 %v2037_v45  ;;  %916 = vmatpush.bf16.msrb.mxu1 %v2039_v46 }
 0x1b3   :  { %929 = vmatpush.bf16.msrb.mxu2 %v2042_v53  ;;  %942 = vmatpush.bf16.msrb.mxu3 %v2045_v56 }
 0x1b6   :  { %904 = vmatpush.bf16.msrb.mxu0 %v2049_v57  ;;  %917 = vmatpush.bf16.msrb.mxu1 %v2051_v58 }
 0x1b7   :  { %930 = vmatpush.bf16.msrb.mxu2 %v2057_v2  ;;  %943 = vmatpush.bf16.msrb.mxu3 %v2060_v5 }
 0x1ba   :  { %905 = vmatpush.bf16.msrb.mxu0 %v2064_v6  ;;  %918 = vmatpush.bf16.msrb.mxu1 %v2066_v7 }
 0x1bb   :  { %931 = vmatpush.bf16.msrb.mxu2 %v2069_v14  ;;  %944 = vmatpush.bf16.msrb.mxu3 %v2072_v15 }
 0x1be   :  { %906 = vmatpush.bf16.msrb.mxu0 %v2076_v16  ;;  %919 = vmatpush.bf16.msrb.mxu1 %v2078_v17 }
 0x1bf   :  { %932 = vmatpush.bf16.msrb.mxu2 %v2085_v25  ;;  %945 = vmatpush.bf16.msrb.mxu3 %v2094_v38 }
 0x1c2   :  { %907 = vmatpush.bf16.msrb.mxu0 %v2090_v30  ;;  %920 = vmatpush.bf16.msrb.mxu1 %v2092_v31 }
 0x1c3   :  { %933 = vmatpush.bf16.msrb.mxu2 %v2097_v48  ;;  %946 = vmatpush.bf16.msrb.mxu3 %v2100_v49 }
 0x1c6   :  { %908 = vmatpush.bf16.msrb.mxu0 %v2104_v51  ;;  %921 = vmatpush.bf16.msrb.mxu1 %v2106_v52 }
 0x1c7   :  { %934 = vmatpush.bf16.msrb.mxu2 %v2110_v60  ;;  %947 = vmatpush.bf16.msrb.mxu3 %v2112_v61 }
 0x225   :  { %v678_v3 = vpop.f32.mrf.mxu0  ;;  %v691_v13 = vpop.f32.mrf.mxu1 }
 0x226   :  { %v679_v63 = vadd.f32 %v678_v3, %v2214_v37  ;;  %v692_v23 = vadd.f32 %v691_v13, %v2216_v39 }
 0x228   :  { %v1688_v24 = vmul.f32 -1.442695, %v679_v63  ;;  %v1689_v11 = vmul.f32 -1.442695, %v692_v23 }
 0x22a   :  { %1783 = vpow2.f32 %v1688_v24 }
 0x22b   :  { %1785 = vpow2.f32 %v1689_v11 }
 0x22c   :  { %v704_v22 = vpop.f32.mrf.mxu2  ;;  %v717_v28 = vpop.f32.mrf.mxu3 }
 0x22d   :  { %v705_v40 = vadd.f32 %v704_v22, %v2659_v1  ;;  %v680_v12 = vpop.f32.mrf.mxu0  ;;  %v693_v10 = vpop.f32.mrf.mxu1  ;;  %v718_v27 = vadd.f32 %v717_v28, %v2660_v0 }
 0x22f   :  { %v1690_v50 = vmul.f32 -1.442695, %v705_v40 }
 0x230   :  { %v1784_v36 = vpop.eup %1783 }
 0x231   :  { %v1786_v42 = vpop.eup %1785  ;;  %v730_v20 = vadd.f32 1.0, %v1784_v36  ;;  %1787 = vpow2.f32 %v1690_v50 }
 0x232   :  { %v731_v21 = vadd.f32 1.0, %v1786_v42 }
 0x233   :  { %1789 = vrcp.f32 %v730_v20  ;;  %v744_v43 = vand.u32 2147483648, %v730_v20  ;;  %v742_v13 = vand.u32 2147483647, %v730_v20  ;;  %vm738_vm12 = vweird.f32 %v730_v20 }
 0x234   :  { %1791 = vrcp.f32 %v731_v21  ;;  %v706_v37 = vpop.f32.mrf.mxu2  ;;  %v719_v39 = vpop.f32.mrf.mxu3  ;;  %v759_v47 = vand.u32 2147483648, %v731_v21  ;;  %v757_v23 = vand.u32 2147483647, %v731_v21  ;;  %vm753_vm13 = vweird.f32 %v731_v21 }
 0x235   :  { %v745_v28 = vor.u32 1.1754944e-38, %v744_v43  ;;  %vm743_vm0 = vcmp.eq.f32.partialorder %v742_v13, 8.507059e+37  ;;  %v2662_v13 = vld [vmem:[#allocation11_spill] sm:$0xff] }
 0x236   :  { %v760_v40 = vor.u32 1.1754944e-38, %v759_v47  ;;  %vm758_vm1 = vcmp.eq.f32.partialorder %v757_v23, 8.507059e+37  ;;  %v2661_v47 = vld [vmem:[#allocation10_spill] sm:$0xff] }
 0x237   :  { %v1788_v26 = vpop.eup %1787 }
 0x238   :  { %v732_v35 = vadd.f32 1.0, %v1788_v26 }
 0x239   :  { %v1790_v8 = vpop.eup %1789 }
 0x23a   :  { %v1792_v55 = vpop.eup %1791  ;;  %v734_v4 = vmul.f32 %v1790_v8, %v730_v20  ;;  %1793 = vrcp.f32 %v732_v35  ;;  %vm739_vm10 = vweird.f32 %v1790_v8  ;;  %vm768_vm3 = vweird.f32 %v732_v35 }
 0x23b   :  { %v749_v9 = vmul.f32 %v1792_v55, %v731_v21  ;;  %1795 = vtanh.f32 %v718_v27  ;;  %vm754_vm11 = vweird.f32 %v1792_v55  ;;  %vm740_vm14 = vmor %vm738_vm12, %vm739_vm10  ;;  %v774_v27 = vand.u32 2147483648, %v732_v35 }
 0x23c   :  { %v735_v59 = vsub.f32 1.0, %v734_v4  ;;  %vm755_vm15 = vmor %vm753_vm13, %vm754_vm11 }
 0x23d   :  { %v750_v62 = vsub.f32 1.0, %v749_v9  ;;  %v775_v9 = vor.u32 1.1754944e-38, %v774_v27 }
 0x23e   :  { %v736_v3 = vmul.f32 %v1790_v8, %v735_v59 }
 0x23f   :  { %v751_v63 = vmul.f32 %v1792_v55, %v750_v62 }
 0x240   :  { %v1794_v24 = vpop.eup %1793  ;;  %v737_v11 = vadd.f32 %v1790_v8, %v736_v3 }
 0x241   :  { %v764_v22 = vmul.f32 %v1794_v24, %v732_v35  ;;  %v752_v1 = vadd.f32 %v1792_v55, %v751_v63  ;;  %v1796_v10 = vpop.eup %1795  ;;  %vm769_vm2 = vweird.f32 %v1794_v24 }
 0x242   :  { %v741_v12 = vsel %vm740_vm14, %v1790_v8, %v737_v11  ;;  %v772_v8 = vand.u32 2147483647, %v732_v35  ;;  %vm770_vm4 = vmor %vm768_vm3, %vm769_vm2 }
 0x243   :  { %v765_v50 = vsub.f32 1.0, %v764_v22  ;;  %v746_v36 = vsel %vm743_vm0, %v745_v28, %v741_v12  ;;  %v756_v42 = vsel %vm755_vm15, %v1792_v55, %v752_v1  ;;  %v2663_v28 = vld [vmem:[#allocation12_spill] sm:$0xff] }
 0x244   :  { %v761_v37 = vsel %vm758_vm1, %v760_v40, %v756_v42  ;;  %v780_v39 = vmul.f32 %v1796_v10, %v746_v36  ;;  %vm773_vm5 = vcmp.eq.f32.partialorder %v772_v8, 8.507059e+37  ;;  %v2664_v8 = vld [vmem:[#allocation13_spill] sm:$0xff] }
 0x245   :  { %v779_v26 = vmul.f32 %v761_v37, %v2311_v54  ;;  %v766_v0 = vmul.f32 %v1794_v24, %v765_v50 }
 0x247   :  { %v2351_v20 = vadd.f32 %v780_v39, %v779_v26  ;;  %v767_v21 = vadd.f32 %v1794_v24, %v766_v0 }
 0x249   :  { %1797 = vtanh.f32 %v2351_v20  ;;  %v771_v4 = vsel %vm770_vm4, %v1794_v24, %v767_v21 }
 0x24a   :  { %v776_v59 = vsel %vm773_vm5, %v775_v9, %v771_v4 }
 0x24f   :  { %v1798_v55 = vpop.eup %1797 }
 0x250   :  { %v783_v62 = vmul.f32 %v1798_v55, %v776_v59 }
 0x252   :  { %v784_v43 = vpack.c.bf16 %v783_v62, %v783_v62 }
 0x254   :  { %793 = vmatmul.bf16.vlgmr.msra.gmra.mxu0 %v784_v43  ;;  %806 = vmatmul.bf16.vlgmr.msra.gmra.mxu1 %v784_v43 }
 0x255   :  { %819 = vmatmul.bf16.vlgmr.msra.gmra.mxu2 %v784_v43  ;;  %832 = vmatmul.bf16.vlgmr.msra.gmra.mxu3 %v784_v43 }
 0x256   :  { %1017 = vmatpush.bf16.msra.mxu0 %v2007_v18  ;;  %1030 = vmatpush.bf16.msra.mxu1 %v2009_v19 }
 0x257   :  { %1043 = vmatpush.bf16.msra.mxu2 %v2015_v29  ;;  %1056 = vmatpush.bf16.msra.mxu3 %v2017_v32 }
 0x25a   :  { %1018 = vmatpush.bf16.msra.mxu0 %v2021_v33  ;;  %1031 = vmatpush.bf16.msra.mxu1 %v2023_v34 }
 0x25b   :  { %1044 = vmatpush.bf16.msra.mxu2 %v2030_v41  ;;  %1057 = vmatpush.bf16.msra.mxu3 %v2033_v44 }
 0x25e   :  { %1019 = vmatpush.bf16.msra.mxu0 %v2037_v45  ;;  %1032 = vmatpush.bf16.msra.mxu1 %v2039_v46 }
 0x25f   :  { %1045 = vmatpush.bf16.msra.mxu2 %v2042_v53  ;;  %1058 = vmatpush.bf16.msra.mxu3 %v2045_v56 }
 0x262   :  { %1020 = vmatpush.bf16.msra.mxu0 %v2049_v57  ;;  %1033 = vmatpush.bf16.msra.mxu1 %v2051_v58 }
 0x263   :  { %1046 = vmatpush.bf16.msra.mxu2 %v2057_v2  ;;  %1059 = vmatpush.bf16.msra.mxu3 %v2060_v5 }
 0x266   :  { %1021 = vmatpush.bf16.msra.mxu0 %v2064_v6  ;;  %1034 = vmatpush.bf16.msra.mxu1 %v2066_v7 }
 0x267   :  { %1047 = vmatpush.bf16.msra.mxu2 %v2069_v14  ;;  %1060 = vmatpush.bf16.msra.mxu3 %v2072_v15 }
 0x26a   :  { %1022 = vmatpush.bf16.msra.mxu0 %v2076_v16  ;;  %1035 = vmatpush.bf16.msra.mxu1 %v2078_v17 }
 0x26b   :  { %1048 = vmatpush.bf16.msra.mxu2 %v2085_v25  ;;  %1061 = vmatpush.bf16.msra.mxu3 %v2094_v38 }
 0x26e   :  { %1023 = vmatpush.bf16.msra.mxu0 %v2090_v30  ;;  %1036 = vmatpush.bf16.msra.mxu1 %v2092_v31 }
 0x26f   :  { %1049 = vmatpush.bf16.msra.mxu2 %v2097_v48  ;;  %1062 = vmatpush.bf16.msra.mxu3 %v2100_v49 }
 0x272   :  { %1024 = vmatpush.bf16.msra.mxu0 %v2104_v51  ;;  %1037 = vmatpush.bf16.msra.mxu1 %v2106_v52 }
 0x273   :  { %1050 = vmatpush.bf16.msra.mxu2 %v2110_v60  ;;  %1063 = vmatpush.bf16.msra.mxu3 %v2112_v61 }
 0x2d1   :  { %v794_v54 = vpop.f32.mrf.mxu0  ;;  %v807_v35 = vpop.f32.mrf.mxu1 }
 0x2d2   :  { %v795_v3 = vadd.f32 %v794_v54, %v2661_v47  ;;  %v808_v63 = vadd.f32 %v807_v35, %v2662_v13 }
 0x2d4   :  { %v1691_v23 = vmul.f32 -1.442695, %v795_v3  ;;  %v1692_v24 = vmul.f32 -1.442695, %v808_v63 }
 0x2d6   :  { %1799 = vpow2.f32 %v1691_v23 }
 0x2d7   :  { %1801 = vpow2.f32 %v1692_v24 }
 0x2d8   :  { %v820_v11 = vpop.f32.mrf.mxu2  ;;  %v833_v22 = vpop.f32.mrf.mxu3 }
 0x2d9   :  { %v821_v1 = vadd.f32 %v820_v11, %v2663_v28  ;;  %v796_v40 = vpop.f32.mrf.mxu0  ;;  %v809_v12 = vpop.f32.mrf.mxu1  ;;  %v834_v4 = vadd.f32 %v833_v22, %v2664_v8 }
 0x2db   :  { %v1693_v10 = vmul.f32 -1.442695, %v821_v1 }
 0x2dc   :  { %v1800_v50 = vpop.eup %1799 }
 0x2dd   :  { %v1802_v36 = vpop.eup %1801  ;;  %v846_v42 = vadd.f32 1.0, %v1800_v50  ;;  %1803 = vpow2.f32 %v1693_v10 }
 0x2de   :  { %v847_v37 = vadd.f32 1.0, %v1802_v36 }
 0x2df   :  { %1805 = vrcp.f32 %v846_v42  ;;  %v860_v54 = vand.u32 2147483648, %v846_v42  ;;  %v858_v3 = vand.u32 2147483647, %v846_v42  ;;  %vm854_vm8 = vweird.f32 %v846_v42 }
 0x2e0   :  { %1807 = vrcp.f32 %v847_v37  ;;  %v822_v39 = vpop.f32.mrf.mxu2  ;;  %v835_v26 = vpop.f32.mrf.mxu3  ;;  %v875_v35 = vand.u32 2147483648, %v847_v37  ;;  %v873_v63 = vand.u32 2147483647, %v847_v37  ;;  %vm869_vm9 = vweird.f32 %v847_v37 }
 0x2e1   :  { %v861_v22 = vor.u32 1.1754944e-38, %v860_v54  ;;  %vm859_vm12 = vcmp.eq.f32.partialorder %v858_v3, 8.507059e+37  ;;  %v2666_v3 = vld [vmem:[#allocation15_spill] sm:$0xff] }
 0x2e2   :  { %v876_v1 = vor.u32 1.1754944e-38, %v875_v35  ;;  %vm874_vm13 = vcmp.eq.f32.partialorder %v873_v63, 8.507059e+37  ;;  %v2665_v35 = vld [vmem:[#allocation14_spill] sm:$0xff] }
 0x2e3   :  { %v1804_v0 = vpop.eup %1803 }
 0x2e4   :  { %v848_v21 = vadd.f32 1.0, %v1804_v0 }
 0x2e5   :  { %v1806_v27 = vpop.eup %1805 }
 0x2e6   :  { %v1808_v9 = vpop.eup %1807  ;;  %v850_v55 = vmul.f32 %v1806_v27, %v846_v42  ;;  %1809 = vrcp.f32 %v848_v21  ;;  %vm855_vm6 = vweird.f32 %v1806_v27  ;;  %vm884_vm15 = vweird.f32 %v848_v21 }
 0x2e7   :  { %v865_v59 = vmul.f32 %v1808_v9, %v847_v37  ;;  %1811 = vtanh.f32 %v834_v4  ;;  %vm870_vm7 = vweird.f32 %v1808_v9  ;;  %vm856_vm10 = vmor %vm854_vm8, %vm855_vm6  ;;  %v890_v4 = vand.u32 2147483648, %v848_v21 }
 0x2e8   :  { %v851_v62 = vsub.f32 1.0, %v850_v55  ;;  %vm871_vm11 = vmor %vm869_vm9, %vm870_vm7 }
 0x2e9   :  { %v866_v43 = vsub.f32 1.0, %v865_v59  ;;  %v891_v59 = vor.u32 1.1754944e-38, %v890_v4 }
 0x2ea   :  { %v852_v47 = vmul.f32 %v1806_v27, %v851_v62 }
 0x2eb   :  { %v867_v13 = vmul.f32 %v1808_v9, %v866_v43 }
 0x2ec   :  { %v1810_v23 = vpop.eup %1809  ;;  %v853_v24 = vadd.f32 %v1806_v27, %v852_v47 }
 0x2ed   :  { %v880_v11 = vmul.f32 %v1810_v23, %v848_v21  ;;  %v868_v28 = vadd.f32 %v1808_v9, %v867_v13  ;;  %v1812_v12 = vpop.eup %1811  ;;  %vm885_vm14 = vweird.f32 %v1810_v23 }
 0x2ee   :  { %v857_v40 = vsel %vm856_vm10, %v1806_v27, %v853_v24  ;;  %v888_v27 = vand.u32 2147483647, %v848_v21  ;;  %vm886_vm0 = vmor %vm884_vm15, %vm885_vm14 }
 0x2ef   :  { %v881_v10 = vsub.f32 1.0, %v880_v11  ;;  %v862_v50 = vsel %vm859_vm12, %v861_v22, %v857_v40  ;;  %v872_v36 = vsel %vm871_vm11, %v1808_v9, %v868_v28  ;;  %v2667_v22 = vld [vmem:[#allocation16_spill] sm:$0xff] }
 0x2f0   :  { %v877_v39 = vsel %vm874_vm13, %v876_v1, %v872_v36  ;;  %v896_v26 = vmul.f32 %v1812_v12, %v862_v50  ;;  %vm889_vm1 = vcmp.eq.f32.partialorder %v888_v27, 8.507059e+37  ;;  %v2668_v27 = vld [vmem:[#allocation17_spill] sm:$0xff] }
 0x2f1   :  { %v895_v0 = vmul.f32 %v877_v39, %v2351_v20  ;;  %v882_v8 = vmul.f32 %v1810_v23, %v881_v10 }
 0x2f3   :  { %v2391_v42 = vadd.f32 %v896_v26, %v895_v0  ;;  %v883_v37 = vadd.f32 %v1810_v23, %v882_v8 }
 0x2f5   :  { %1813 = vtanh.f32 %v2391_v42  ;;  %v887_v55 = vsel %vm886_vm0, %v1810_v23, %v883_v37 }
 0x2f6   :  { %v892_v62 = vsel %vm889_vm1, %v891_v59, %v887_v55 }
 0x2fb   :  { %v1814_v9 = vpop.eup %1813 }
 0x2fc   :  { %v899_v43 = vmul.f32 %v1814_v9, %v892_v62 }
 0x2fe   :  { %v900_v54 = vpack.c.bf16 %v899_v43, %v899_v43 }
 0x300   :  { %909 = vmatmul.bf16.vlgmr.msrb.gmra.mxu0 %v900_v54  ;;  %922 = vmatmul.bf16.vlgmr.msrb.gmra.mxu1 %v900_v54 }
 0x301   :  { %935 = vmatmul.bf16.vlgmr.msrb.gmra.mxu2 %v900_v54  ;;  %948 = vmatmul.bf16.vlgmr.msrb.gmra.mxu3 %v900_v54 }
 0x302   :  { %1133 = vmatpush.bf16.msrb.mxu0 %v2007_v18  ;;  %1146 = vmatpush.bf16.msrb.mxu1 %v2009_v19 }
 0x303   :  { %1159 = vmatpush.bf16.msrb.mxu2 %v2015_v29  ;;  %1172 = vmatpush.bf16.msrb.mxu3 %v2017_v32 }
 0x306   :  { %1134 = vmatpush.bf16.msrb.mxu0 %v2021_v33  ;;  %1147 = vmatpush.bf16.msrb.mxu1 %v2023_v34 }
 0x307   :  { %1160 = vmatpush.bf16.msrb.mxu2 %v2030_v41  ;;  %1173 = vmatpush.bf16.msrb.mxu3 %v2033_v44 }
 0x30a   :  { %1135 = vmatpush.bf16.msrb.mxu0 %v2037_v45  ;;  %1148 = vmatpush.bf16.msrb.mxu1 %v2039_v46 }
 0x30b   :  { %1161 = vmatpush.bf16.msrb.mxu2 %v2042_v53  ;;  %1174 = vmatpush.bf16.msrb.mxu3 %v2045_v56 }
 0x30e   :  { %1136 = vmatpush.bf16.msrb.mxu0 %v2049_v57  ;;  %1149 = vmatpush.bf16.msrb.mxu1 %v2051_v58 }
 0x30f   :  { %1162 = vmatpush.bf16.msrb.mxu2 %v2057_v2  ;;  %1175 = vmatpush.bf16.msrb.mxu3 %v2060_v5 }
 0x312   :  { %1137 = vmatpush.bf16.msrb.mxu0 %v2064_v6  ;;  %1150 = vmatpush.bf16.msrb.mxu1 %v2066_v7 }
 0x313   :  { %1163 = vmatpush.bf16.msrb.mxu2 %v2069_v14  ;;  %1176 = vmatpush.bf16.msrb.mxu3 %v2072_v15 }
 0x316   :  { %1138 = vmatpush.bf16.msrb.mxu0 %v2076_v16  ;;  %1151 = vmatpush.bf16.msrb.mxu1 %v2078_v17 }
 0x317   :  { %1164 = vmatpush.bf16.msrb.mxu2 %v2085_v25  ;;  %1177 = vmatpush.bf16.msrb.mxu3 %v2094_v38 }
 0x31a   :  { %1139 = vmatpush.bf16.msrb.mxu0 %v2090_v30  ;;  %1152 = vmatpush.bf16.msrb.mxu1 %v2092_v31 }
 0x31b   :  { %1165 = vmatpush.bf16.msrb.mxu2 %v2097_v48  ;;  %1178 = vmatpush.bf16.msrb.mxu3 %v2100_v49 }
 0x31e   :  { %1140 = vmatpush.bf16.msrb.mxu0 %v2104_v51  ;;  %1153 = vmatpush.bf16.msrb.mxu1 %v2106_v52 }
 0x31f   :  { %1166 = vmatpush.bf16.msrb.mxu2 %v2110_v60  ;;  %1179 = vmatpush.bf16.msrb.mxu3 %v2112_v61 }
 0x37d   :  { %v910_v20 = vpop.f32.mrf.mxu0  ;;  %v923_v21 = vpop.f32.mrf.mxu1 }
 0x37e   :  { %v911_v47 = vadd.f32 %v910_v20, %v2665_v35  ;;  %v924_v13 = vadd.f32 %v923_v21, %v2666_v3 }
 0x380   :  { %v1694_v63 = vmul.f32 -1.442695, %v911_v47  ;;  %v1695_v23 = vmul.f32 -1.442695, %v924_v13 }
 0x382   :  { %1815 = vpow2.f32 %v1694_v63 }
 0x383   :  { %1817 = vpow2.f32 %v1695_v23 }
 0x384   :  { %v936_v24 = vpop.f32.mrf.mxu2  ;;  %v949_v11 = vpop.f32.mrf.mxu3 }
 0x385   :  { %v937_v28 = vadd.f32 %v936_v24, %v2667_v22  ;;  %v912_v1 = vpop.f32.mrf.mxu0  ;;  %v925_v40 = vpop.f32.mrf.mxu1  ;;  %v950_v55 = vadd.f32 %v949_v11, %v2668_v27 }
 0x387   :  { %v1696_v12 = vmul.f32 -1.442695, %v937_v28 }
 0x388   :  { %v1816_v10 = vpop.eup %1815 }
 0x389   :  { %v1818_v50 = vpop.eup %1817  ;;  %v962_v36 = vadd.f32 1.0, %v1816_v10  ;;  %1819 = vpow2.f32 %v1696_v12 }
 0x38a   :  { %v963_v39 = vadd.f32 1.0, %v1818_v50 }
 0x38b   :  { %1821 = vrcp.f32 %v962_v36  ;;  %v976_v20 = vand.u32 2147483648, %v962_v36  ;;  %v974_v47 = vand.u32 2147483647, %v962_v36  ;;  %vm970_vm4 = vweird.f32 %v962_v36 }
 0x38c   :  { %1823 = vrcp.f32 %v963_v39  ;;  %v938_v26 = vpop.f32.mrf.mxu2  ;;  %v951_v0 = vpop.f32.mrf.mxu3  ;;  %v991_v21 = vand.u32 2147483648, %v963_v39  ;;  %v989_v13 = vand.u32 2147483647, %v963_v39  ;;  %vm985_vm5 = vweird.f32 %v963_v39 }
 0x38d   :  { %v977_v11 = vor.u32 1.1754944e-38, %v976_v20  ;;  %vm975_vm8 = vcmp.eq.f32.partialorder %v974_v47, 8.507059e+37 }
 0x38e   :  { %v992_v28 = vor.u32 1.1754944e-38, %v991_v21  ;;  %vm990_vm9 = vcmp.eq.f32.partialorder %v989_v13, 8.507059e+37 }
 0x38f   :  { %v1820_v8 = vpop.eup %1819 }
 0x390   :  { %v964_v37 = vadd.f32 1.0, %v1820_v8 }
 0x391   :  { %v1822_v4 = vpop.eup %1821 }
 0x392   :  { %v1824_v59 = vpop.eup %1823  ;;  %v966_v9 = vmul.f32 %v1822_v4, %v962_v36  ;;  %1825 = vrcp.f32 %v964_v37  ;;  %vm971_vm2 = vweird.f32 %v1822_v4  ;;  %vm1000_vm11 = vweird.f32 %v964_v37 }
 0x393   :  { %v981_v62 = vmul.f32 %v1824_v59, %v963_v39  ;;  %1827 = vtanh.f32 %v950_v55  ;;  %vm986_vm3 = vweird.f32 %v1824_v59  ;;  %vm972_vm6 = vmor %vm970_vm4, %vm971_vm2  ;;  %v1006_v55 = vand.u32 2147483648, %v964_v37 }
 0x394   :  { %v967_v43 = vsub.f32 1.0, %v966_v9  ;;  %vm987_vm7 = vmor %vm985_vm5, %vm986_vm3 }
 0x395   :  { %v982_v54 = vsub.f32 1.0, %v981_v62  ;;  %v1007_v62 = vor.u32 1.1754944e-38, %v1006_v55 }
 0x396   :  { %v968_v35 = vmul.f32 %v1822_v4, %v967_v43 }
 0x397   :  { %v983_v3 = vmul.f32 %v1824_v59, %v982_v54 }
 0x398   :  { %v1826_v63 = vpop.eup %1825  ;;  %v969_v23 = vadd.f32 %v1822_v4, %v968_v35 }
 0x399   :  { %v996_v24 = vmul.f32 %v1826_v63, %v964_v37  ;;  %v984_v22 = vadd.f32 %v1824_v59, %v983_v3  ;;  %v1828_v40 = vpop.eup %1827  ;;  %vm1001_vm10 = vweird.f32 %v1826_v63 }
 0x39a   :  { %v973_v1 = vsel %vm972_vm6, %v1822_v4, %v969_v23  ;;  %v1004_v4 = vand.u32 2147483647, %v964_v37  ;;  %vm1002_vm12 = vmor %vm1000_vm11, %vm1001_vm10 }
 0x39b   :  { %v997_v12 = vsub.f32 1.0, %v996_v24  ;;  %v978_v10 = vsel %vm975_vm8, %v977_v11, %v973_v1  ;;  %v988_v50 = vsel %vm987_vm7, %v1824_v59, %v984_v22 }
 0x39c   :  { %v993_v26 = vsel %vm990_vm9, %v992_v28, %v988_v50  ;;  %v1012_v0 = vmul.f32 %v1828_v40, %v978_v10  ;;  %vm1005_vm13 = vcmp.eq.f32.partialorder %v1004_v4, 8.507059e+37 }
 0x39d   :  { %v1011_v8 = vmul.f32 %v993_v26, %v2391_v42  ;;  %v998_v27 = vmul.f32 %v1826_v63, %v997_v12 }
 0x39f   :  { %v2431_v36 = vadd.f32 %v1012_v0, %v1011_v8  ;;  %v999_v39 = vadd.f32 %v1826_v63, %v998_v27 }
 0x3a1   :  { %1829 = vtanh.f32 %v2431_v36  ;;  %v1003_v9 = vsel %vm1002_vm12, %v1826_v63, %v999_v39 }
 0x3a2   :  { %v1008_v43 = vsel %vm1005_vm13, %v1007_v62, %v1003_v9 }
 0x3a7   :  { %v1830_v59 = vpop.eup %1829 }
 0x3a8   :  { %v1015_v54 = vmul.f32 %v1830_v59, %v1008_v43 }
 0x3aa   :  { %v1016_v20 = vpack.c.bf16 %v1015_v54, %v1015_v54 }
 0x3ac   :  { %1025 = vmatmul.bf16.vlgmr.msra.gmra.mxu0 %v1016_v20  ;;  %1038 = vmatmul.bf16.vlgmr.msra.gmra.mxu1 %v1016_v20 }
 0x3ad   :  { %1051 = vmatmul.bf16.vlgmr.msra.gmra.mxu2 %v1016_v20  ;;  %1064 = vmatmul.bf16.vlgmr.msra.gmra.mxu3 %v1016_v20 }
 0x3ae   :  { %1249 = vmatpush.bf16.msra.mxu0 %v2007_v18  ;;  %1262 = vmatpush.bf16.msra.mxu1 %v2009_v19 }
 0x3af   :  { %1275 = vmatpush.bf16.msra.mxu2 %v2015_v29  ;;  %1288 = vmatpush.bf16.msra.mxu3 %v2017_v32  ;;  %v2669_v29 = vld [vmem:[#allocation18_spill] sm:$0xff] }
 0x3b2   :  { %1250 = vmatpush.bf16.msra.mxu0 %v2021_v33  ;;  %1263 = vmatpush.bf16.msra.mxu1 %v2023_v34  ;;  %v2670_v33 = vld [vmem:[#allocation19_spill] sm:$0xff] }
 0x3b3   :  { %1276 = vmatpush.bf16.msra.mxu2 %v2030_v41  ;;  %1289 = vmatpush.bf16.msra.mxu3 %v2033_v44 }
 0x3b6   :  { %1251 = vmatpush.bf16.msra.mxu0 %v2037_v45  ;;  %1264 = vmatpush.bf16.msra.mxu1 %v2039_v46 }
 0x3b7   :  { %1277 = vmatpush.bf16.msra.mxu2 %v2042_v53  ;;  %1290 = vmatpush.bf16.msra.mxu3 %v2045_v56  ;;  %v2671_v53 = vld [vmem:[#allocation20_spill] sm:$0xff] }
 0x3ba   :  { %1252 = vmatpush.bf16.msra.mxu0 %v2049_v57  ;;  %1265 = vmatpush.bf16.msra.mxu1 %v2051_v58 }
 0x3bb   :  { %1278 = vmatpush.bf16.msra.mxu2 %v2057_v2  ;;  %1291 = vmatpush.bf16.msra.mxu3 %v2060_v5 }
 0x3be   :  { %1253 = vmatpush.bf16.msra.mxu0 %v2064_v6  ;;  %1266 = vmatpush.bf16.msra.mxu1 %v2066_v7 }
 0x3bf   :  { %1279 = vmatpush.bf16.msra.mxu2 %v2069_v14  ;;  %1292 = vmatpush.bf16.msra.mxu3 %v2072_v15 }
 0x3c2   :  { %1254 = vmatpush.bf16.msra.mxu0 %v2076_v16  ;;  %1267 = vmatpush.bf16.msra.mxu1 %v2078_v17 }
 0x3c3   :  { %1280 = vmatpush.bf16.msra.mxu2 %v2085_v25  ;;  %1293 = vmatpush.bf16.msra.mxu3 %v2094_v38 }
 0x3c6   :  { %1255 = vmatpush.bf16.msra.mxu0 %v2090_v30  ;;  %1268 = vmatpush.bf16.msra.mxu1 %v2092_v31  ;;  %v2672_v31 = vld [vmem:[#allocation21_spill] sm:$0xff] }
 0x3c7   :  { %1281 = vmatpush.bf16.msra.mxu2 %v2097_v48  ;;  %1294 = vmatpush.bf16.msra.mxu3 %v2100_v49 }
 0x3ca   :  { %1256 = vmatpush.bf16.msra.mxu0 %v2104_v51  ;;  %1269 = vmatpush.bf16.msra.mxu1 %v2106_v52 }
 0x3cb   :  { %1282 = vmatpush.bf16.msra.mxu2 %v2110_v60  ;;  %1295 = vmatpush.bf16.msra.mxu3 %v2112_v61 }
 0x429   :  { %v1026_v18 = vpop.f32.mrf.mxu0  ;;  %v1039_v19 = vpop.f32.mrf.mxu1 }
 0x42a   :  { %v1027_v32 = vadd.f32 %v1026_v18, %v2669_v29  ;;  %v1040_v34 = vadd.f32 %v1039_v19, %v2670_v33  ;;  %v2673_v18 = vld [vmem:[#allocation22_spill] sm:$0xff]  ;;  %v2674_v29 = vld [vmem:[#allocation23_spill] sm:$0xff] }
 0x42c   :  { %v1697_v41 = vmul.f32 -1.442695, %v1027_v32  ;;  %v1698_v44 = vmul.f32 -1.442695, %v1040_v34 }
 0x42e   :  { %1831 = vpow2.f32 %v1697_v41 }
 0x42f   :  { %1833 = vpow2.f32 %v1698_v44 }
 0x430   :  { %v1052_v45 = vpop.f32.mrf.mxu2  ;;  %v1065_v46 = vpop.f32.mrf.mxu3 }
 0x431   :  { %v1053_v56 = vadd.f32 %v1052_v45, %v2671_v53  ;;  %v1028_v57 = vpop.f32.mrf.mxu0  ;;  %v1041_v58 = vpop.f32.mrf.mxu1  ;;  %v1066_v38 = vadd.f32 %v1065_v46, %v2672_v31  ;;  %v2675_v45 = vld [vmem:[#allocation24_spill] sm:$0xff] }
 0x433   :  { %v1699_v2 = vmul.f32 -1.442695, %v1053_v56 }
 0x434   :  { %v1832_v5 = vpop.eup %1831 }
 0x435   :  { %v1834_v6 = vpop.eup %1833  ;;  %v1078_v7 = vadd.f32 1.0, %v1832_v5  ;;  %1835 = vpow2.f32 %v1699_v2 }
 0x436   :  { %v1079_v14 = vadd.f32 1.0, %v1834_v6 }
 0x437   :  { %1837 = vrcp.f32 %v1078_v7  ;;  %v1092_v61 = vand.u32 2147483648, %v1078_v7  ;;  %v1090_v21 = vand.u32 2147483647, %v1078_v7  ;;  %vm1086_vm0 = vweird.f32 %v1078_v7 }
 0x438   :  { %1839 = vrcp.f32 %v1079_v14  ;;  %v1054_v15 = vpop.f32.mrf.mxu2  ;;  %v1067_v16 = vpop.f32.mrf.mxu3  ;;  %v1107_v42 = vand.u32 2147483648, %v1079_v14  ;;  %v1105_v47 = vand.u32 2147483647, %v1079_v14  ;;  %vm1101_vm1 = vweird.f32 %v1079_v14 }
 0x439   :  { %v1093_v23 = vor.u32 1.1754944e-38, %v1092_v61  ;;  %vm1091_vm4 = vcmp.eq.f32.partialorder %v1090_v21, 8.507059e+37 }
 0x43a   :  { %v1108_v11 = vor.u32 1.1754944e-38, %v1107_v42  ;;  %vm1106_vm5 = vcmp.eq.f32.partialorder %v1105_v47, 8.507059e+37 }
 0x43b   :  { %v1836_v17 = vpop.eup %1835 }
 0x43c   :  { %v1080_v25 = vadd.f32 1.0, %v1836_v17 }
 0x43d   :  { %v1838_v30 = vpop.eup %1837 }
 0x43e   :  { %v1840_v48 = vpop.eup %1839  ;;  %v1082_v49 = vmul.f32 %v1838_v30, %v1078_v7  ;;  %1841 = vrcp.f32 %v1080_v25  ;;  %vm1087_vm14 = vweird.f32 %v1838_v30  ;;  %v1122_v39 = vand.u32 2147483648, %v1080_v25 }
 0x43f   :  { %v1097_v51 = vmul.f32 %v1840_v48, %v1079_v14  ;;  %1843 = vtanh.f32 %v1066_v38  ;;  %vm1102_vm15 = vweird.f32 %v1840_v48  ;;  %vm1088_vm2 = vmor %vm1086_vm0, %vm1087_vm14  ;;  %vm1116_vm7 = vweird.f32 %v1080_v25 }
 0x440   :  { %v1083_v52 = vsub.f32 1.0, %v1082_v49  ;;  %vm1103_vm3 = vmor %vm1101_vm1, %vm1102_vm15  ;;  %v1120_v55 = vand.u32 2147483647, %v1080_v25  ;;  %v1123_v9 = vor.u32 1.1754944e-38, %v1122_v39 }
 0x441   :  { %v1098_v60 = vsub.f32 1.0, %v1097_v51 }
 0x442   :  { %v1084_v37 = vmul.f32 %v1838_v30, %v1083_v52  ;;  %vm1121_vm9 = vcmp.eq.f32.partialorder %v1120_v55, 8.507059e+37 }
 0x443   :  { %v1099_v35 = vmul.f32 %v1840_v48, %v1098_v60 }
 0x444   :  { %v1842_v3 = vpop.eup %1841  ;;  %v1085_v13 = vadd.f32 %v1838_v30, %v1084_v37 }
 0x445   :  { %v1112_v63 = vmul.f32 %v1842_v3, %v1080_v25  ;;  %v1100_v24 = vadd.f32 %v1840_v48, %v1099_v35  ;;  %v1844_v28 = vpop.eup %1843  ;;  %vm1117_vm6 = vweird.f32 %v1842_v3  ;;  %v2676_v25 = vld [vmem:[#allocation25_spill] sm:$0xff] }
 0x446   :  { %v1089_v22 = vsel %vm1088_vm2, %v1838_v30, %v1085_v13  ;;  %vm1118_vm8 = vmor %vm1116_vm7, %vm1117_vm6 }
 0x447   :  { %v1113_v1 = vsub.f32 1.0, %v1112_v63  ;;  %v1094_v40 = vsel %vm1091_vm4, %v1093_v23, %v1089_v22  ;;  %v1104_v12 = vsel %vm1103_vm3, %v1840_v48, %v1100_v24 }
 0x448   :  { %v1109_v10 = vsel %vm1106_vm5, %v1108_v11, %v1104_v12  ;;  %v1128_v50 = vmul.f32 %v1844_v28, %v1094_v40 }
 0x449   :  { %v1127_v26 = vmul.f32 %v1109_v10, %v2431_v36  ;;  %v1114_v0 = vmul.f32 %v1842_v3, %v1113_v1 }
 0x44b   :  { %v2471_v8 = vadd.f32 %v1128_v50, %v1127_v26  ;;  %v1115_v27 = vadd.f32 %v1842_v3, %v1114_v0 }
 0x44d   :  { %1845 = vtanh.f32 %v2471_v8  ;;  %v1119_v4 = vsel %vm1118_vm8, %v1842_v3, %v1115_v27 }
 0x44e   :  { %v1124_v59 = vsel %vm1121_vm9, %v1123_v9, %v1119_v4 }
 0x453   :  { %v1846_v62 = vpop.eup %1845 }
 0x454   :  { %v1131_v43 = vmul.f32 %v1846_v62, %v1124_v59 }
 0x456   :  { %v1132_v54 = vpack.c.bf16 %v1131_v43, %v1131_v43 }
 0x458   :  { %1141 = vmatmul.bf16.vlgmr.msrb.gmra.mxu0 %v1132_v54  ;;  %1154 = vmatmul.bf16.vlgmr.msrb.gmra.mxu1 %v1132_v54 }
 0x459   :  { %1167 = vmatmul.bf16.vlgmr.msrb.gmra.mxu2 %v1132_v54  ;;  %1180 = vmatmul.bf16.vlgmr.msrb.gmra.mxu3 %v1132_v54  ;;  %v1378_v54 = vld [vmem:[%s2630_s4 + $0x70] sm:$0xff] }
 0x4d5   :  { %v1142_v36 = vpop.f32.mrf.mxu0  ;;  %v1155_v20 = vpop.f32.mrf.mxu1 }
 0x4d6   :  { %v1143_v19 = vadd.f32 %v1142_v36, %v2673_v18  ;;  %v1156_v32 = vadd.f32 %v1155_v20, %v2674_v29  ;;  %v1377_v36 = vld [vmem:[%s2630_s4 + $0x68] sm:$0xff]  ;;  %v1376_v20 = vld [vmem:[%s2630_s4 + $0x60] sm:$0xff]  ;;  %v1375_v18 = vld [vmem:[%s2630_s4 + $0x58] sm:$0xff] }
 0x4d7   :  { %v1373_v29 = vld [vmem:[%s2630_s4 + $0x48] sm:$0xff] }
 0x4d8   :  { %v1700_v33 = vmul.f32 -1.442695, %v1143_v19  ;;  %v1701_v34 = vmul.f32 -1.442695, %v1156_v32  ;;  %v1374_v19 = vld [vmem:[%s2630_s4 + $0x50] sm:$0xff]  ;;  %v1372_v32 = vld [vmem:[%s2630_s4 + $0x40] sm:$0xff] }
 0x4da   :  { %1847 = vpow2.f32 %v1700_v33  ;;  %v1371_v33 = vld [vmem:[%s2630_s4 + $0x38] sm:$0xff] }
 0x4db   :  { %1849 = vpow2.f32 %v1701_v34 }
 0x4dc   :  { %v1168_v41 = vpop.f32.mrf.mxu2  ;;  %v1181_v44 = vpop.f32.mrf.mxu3 }
 0x4dd   :  { %v1169_v46 = vadd.f32 %v1168_v41, %v2675_v45  ;;  %v1144_v53 = vpop.f32.mrf.mxu0  ;;  %v1157_v56 = vpop.f32.mrf.mxu1  ;;  %v1182_v30 = vadd.f32 %v1181_v44, %v2676_v25  ;;  %v1370_v44 = vld [vmem:[%s2630_s4 + $0x30] sm:$0xff]  ;;  %v2677_v45 = vld [vmem:[#allocation26_spill] sm:$0xff] }
 0x4de   :  { %v2678_v53 = vld [vmem:[#allocation27_spill] sm:$0xff] }
 0x4df   :  { %v1702_v57 = vmul.f32 -1.442695, %v1169_v46 }
 0x4e0   :  { %v1848_v58 = vpop.eup %1847 }
 0x4e1   :  { %v1850_v2 = vpop.eup %1849  ;;  %v1194_v5 = vadd.f32 1.0, %v1848_v58  ;;  %1851 = vpow2.f32 %v1702_v57  ;;  %v1369_v57 = vld [vmem:[%s2630_s4 + $0x28] sm:$0xff] }
 0x4e2   :  { %v1195_v6 = vadd.f32 1.0, %v1850_v2 }
 0x4e3   :  { %1853 = vrcp.f32 %v1194_v5  ;;  %v1208_v52 = vand.u32 2147483648, %v1194_v5  ;;  %v1206_v42 = vand.u32 2147483647, %v1194_v5  ;;  %vm1202_vm12 = vweird.f32 %v1194_v5 }
 0x4e4   :  { %1855 = vrcp.f32 %v1195_v6  ;;  %v1170_v7 = vpop.f32.mrf.mxu2  ;;  %v1183_v14 = vpop.f32.mrf.mxu3  ;;  %v1223_v60 = vand.u32 2147483648, %v1195_v6  ;;  %v1221_v21 = vand.u32 2147483647, %v1195_v6  ;;  %vm1217_vm13 = vweird.f32 %v1195_v6 }
 0x4e5   :  { %v1209_v13 = vor.u32 1.1754944e-38, %v1208_v52  ;;  %vm1207_vm0 = vcmp.eq.f32.partialorder %v1206_v42, 8.507059e+37  ;;  %v1366_v7 = vld [vmem:[%s2630_s4 + $0x10] sm:$0xff] }
 0x4e6   :  { %v1224_v23 = vor.u32 1.1754944e-38, %v1223_v60  ;;  %vm1222_vm1 = vcmp.eq.f32.partialorder %v1221_v21, 8.507059e+37  ;;  %v1419_v42 = vld [vmem:[%s2632_s6 + $0x70] sm:$0xff] }
 0x4e7   :  { %v1852_v15 = vpop.eup %1851 }
 0x4e8   :  { %v1196_v16 = vadd.f32 1.0, %v1852_v15 }
 0x4e9   :  { %v1854_v17 = vpop.eup %1853 }
 0x4ea   :  { %v1856_v31 = vpop.eup %1855  ;;  %v1198_v38 = vmul.f32 %v1854_v17, %v1194_v5  ;;  %1857 = vrcp.f32 %v1196_v16  ;;  %vm1203_vm10 = vweird.f32 %v1854_v17  ;;  %v1238_v27 = vand.u32 2147483648, %v1196_v16  ;;  %v1368_v5 = vld [vmem:[%s2630_s4 + $0x20] sm:$0xff] }
 0x4eb   :  { %v1213_v48 = vmul.f32 %v1856_v31, %v1195_v6  ;;  %1859 = vtanh.f32 %v1182_v30  ;;  %vm1218_vm11 = vweird.f32 %v1856_v31  ;;  %vm1204_vm14 = vmor %vm1202_vm12, %vm1203_vm10  ;;  %vm1232_vm3 = vweird.f32 %v1196_v16  ;;  %v1367_v6 = vld [vmem:[%s2630_s4 + $0x18] sm:$0xff] }
 0x4ec   :  { %v1199_v49 = vsub.f32 1.0, %v1198_v38  ;;  %vm1219_vm15 = vmor %vm1217_vm13, %vm1218_vm11  ;;  %v1236_v39 = vand.u32 2147483647, %v1196_v16  ;;  %v1239_v4 = vor.u32 1.1754944e-38, %v1238_v27 }
 0x4ed   :  { %v1214_v51 = vsub.f32 1.0, %v1213_v48  ;;  %v1364_v48 = vld [vmem:[%s2630_s4] sm:$0xff] }
 0x4ee   :  { %v1200_v61 = vmul.f32 %v1854_v17, %v1199_v49  ;;  %vm1237_vm5 = vcmp.eq.f32.partialorder %v1236_v39, 8.507059e+37 }
 0x4ef   :  { %v1215_v37 = vmul.f32 %v1856_v31, %v1214_v51 }
 0x4f0   :  { %v1858_v35 = vpop.eup %1857  ;;  %v1201_v47 = vadd.f32 %v1854_v17, %v1200_v61  ;;  %v1420_v61 = vld [vmem:[%s2632_s6 + $0x78] sm:$0xff] }
 0x4f1   :  { %v1228_v3 = vmul.f32 %v1858_v35, %v1196_v16  ;;  %v1216_v63 = vadd.f32 %v1856_v31, %v1215_v37  ;;  %v1860_v11 = vpop.eup %1859  ;;  %vm1233_vm2 = vweird.f32 %v1858_v35  ;;  %v2679_v16 = vld [vmem:[#allocation28_spill] sm:$0xff]  ;;  %1425 = vmatpush.msrb.mxu1 %v1420_v61  ;;  %v1748_v61 = vld [vmem:[%s2631_s5] ss:$0 sm:$0xff] }
 0x4f2   :  { %v1205_v24 = vsel %vm1204_vm14, %v1854_v17, %v1201_v47  ;;  %vm1234_vm4 = vmor %vm1232_vm3, %vm1233_vm2  ;;  %v1417_v47 = vld [vmem:[%s2632_s6 + $0x60] sm:$0xff]  ;;  %vm1458_vm2 = vcmask 523264  }
 0x4f3   :  { %v1229_v22 = vsub.f32 1.0, %v1228_v3  ;;  %v1210_v28 = vsel %vm1207_vm0, %v1209_v13, %v1205_v24  ;;  %v1220_v1 = vsel %vm1219_vm15, %v1856_v31, %v1216_v63  ;;  %v1365_v31 = vld [vmem:[%s2630_s4 + $0x8] sm:$0xff]  ;;  %1426 = vmatpush.msrb.mxu1 %v1419_v42  ;;  %v1416_v63 = vld [vmem:[%s2632_s6 + $0x58] sm:$0xff]  ;;  %v2680_v24 = vld [vmem:[#allocation29_spill] sm:$0xff] }
 0x4f4   :  { %v1225_v40 = vsel %vm1222_vm1, %v1224_v23, %v1220_v1  ;;  %v1244_v12 = vmul.f32 %v1860_v11, %v1210_v28  ;;  %v1415_v1 = vld [vmem:[%s2632_s6 + $0x50] sm:$0xff] }
 0x4f5   :  { %v1243_v10 = vmul.f32 %v1225_v40, %v2471_v8  ;;  %v1230_v50 = vmul.f32 %v1858_v35, %v1229_v22  ;;  %v1379_v8 = vld [vmem:[%s2630_s4 + $0x78] sm:$0xff] }
 0x4f6   :  { %1384 = vmatpush.msrb.mxu0 %v1379_v8  ;;  %v1412_v8 = vld [vmem:[%s2632_s6 + $0x38] sm:$0xff] }
 0x4f7   :  { %v2479_v26 = vadd.f32 %v1244_v12, %v1243_v10  ;;  %v1231_v0 = vadd.f32 %v1858_v35, %v1230_v50  ;;  %v1414_v10 = vld [vmem:[%s2632_s6 + $0x48] sm:$0xff] }
 0x4f8   :  { %1385 = vmatpush.msrb.mxu0 %v1378_v54 }
 0x4f9   :  { %1861 = vtanh.f32 %v2479_v26  ;;  %v1235_v55 = vsel %vm1234_vm4, %v1858_v35, %v1231_v0  ;;  %v1418_v35 = vld [vmem:[%s2632_s6 + $0x68] sm:$0xff] }
 0x4fa   :  { %v1240_v62 = vsel %vm1237_vm5, %v1239_v4, %v1235_v55  ;;  %1386 = vmatpush.msrb.mxu0 %v1377_v36  ;;  %1427 = vmatpush.msrb.mxu1 %v1418_v35  ;;  %v1413_v4 = vld [vmem:[%s2632_s6 + $0x40] sm:$0xff]  ;;  %v1447_v35 = vld [vmem:[%s2634_s8 + $0x8] sm:$0xff] }
 0x4fc   :  { %1387 = vmatpush.msrb.mxu0 %v1376_v20  ;;  %1428 = vmatpush.msrb.mxu1 %v1417_v47  ;;  %v1446_v47 = vld [vmem:[%s2634_s8] sm:$0xff] }
 0x4fe   :  { %1388 = vmatpush.msrb.mxu0 %v1375_v18  ;;  %1429 = vmatpush.msrb.mxu1 %v1416_v63 }
 0x4ff   :  { %v1862_v9 = vpop.eup %1861 }
 0x500   :  { %v1247_v59 = vmul.f32 %v1862_v9, %v1240_v62  ;;  %1389 = vmatpush.msrb.mxu0 %v1374_v19  ;;  %1430 = vmatpush.msrb.mxu1 %v1415_v1 }
 0x502   :  { %v1248_v43 = vpack.c.bf16 %v1247_v59, %v1247_v59  ;;  %1390 = vmatpush.msrb.mxu0 %v1373_v29  ;;  %1431 = vmatpush.msrb.mxu1 %v1414_v10  ;;  %v1411_v29 = vld [vmem:[%s2632_s6 + $0x30] sm:$0xff] }
 0x504   :  { %1257 = vmatmul.bf16.vlgmr.msra.gmra.mxu0 %v1248_v43  ;;  %1270 = vmatmul.bf16.vlgmr.msra.gmra.mxu1 %v1248_v43 }
 0x505   :  { %1283 = vmatmul.bf16.vlgmr.msra.gmra.mxu2 %v1248_v43  ;;  %1296 = vmatmul.bf16.vlgmr.msra.gmra.mxu3 %v1248_v43 }
 0x506   :  { %1391 = vmatpush.msrb.mxu0 %v1372_v32  ;;  %1432 = vmatpush.msrb.mxu1 %v1413_v4 }
 0x508   :  { %1392 = vmatpush.msrb.mxu0 %v1371_v33  ;;  %1433 = vmatpush.msrb.mxu1 %v1412_v8 }
 0x50a   :  { %1393 = vmatpush.msrb.mxu0 %v1370_v44  ;;  %1434 = vmatpush.msrb.mxu1 %v1411_v29 }
 0x50c   :  { %1394 = vmatpush.msrb.mxu0 %v1369_v57  ;;  %v1409_v57 = vld [vmem:[%s2632_s6 + $0x20] sm:$0xff] }
 0x50e   :  { %1395 = vmatpush.msrb.mxu0 %v1368_v5  ;;  %v1408_v5 = vld [vmem:[%s2632_s6 + $0x18] sm:$0xff] }
 0x510   :  { %1396 = vmatpush.msrb.mxu0 %v1367_v6 }
 0x512   :  { %1397 = vmatpush.msrb.mxu0 %v1366_v7 }
 0x514   :  { %1398 = vmatpush.msrb.mxu0 %v1365_v31  ;;  %v1405_v31 = vld [vmem:[%s2632_s6] sm:$0xff] }
 0x516   :  { %1399 = vmatpush.msrb.mxu0 %v1364_v48  ;;  %v1452_v48 = vld [vmem:[%s2634_s8 + $0x30] sm:$0xff] }
 0x581   :  { %v1258_v34 = vpop.f32.mrf.mxu0  ;;  %v1271_v41 = vpop.f32.mrf.mxu1 }
 0x582   :  { %v1259_v46 = vadd.f32 %v1258_v34, %v2677_v45  ;;  %v1272_v56 = vadd.f32 %v1271_v41, %v2678_v53 }
 0x584   :  { %v1703_v58 = vmul.f32 -1.442695, %v1259_v46  ;;  %v1704_v2 = vmul.f32 -1.442695, %v1272_v56  ;;  %v1410_v46 = vld [vmem:[%s2632_s6 + $0x28] sm:$0xff] }
 0x585   :  { %1435 = vmatpush.msrb.mxu1 %v1410_v46 }
 0x586   :  { %1863 = vpow2.f32 %v1703_v58 }
 0x587   :  { %1865 = vpow2.f32 %v1704_v2  ;;  %1436 = vmatpush.msrb.mxu1 %v1409_v57 }
 0x588   :  { %v1284_v14 = vpop.f32.mrf.mxu2  ;;  %v1297_v15 = vpop.f32.mrf.mxu3 }
 0x589   :  { %v1285_v17 = vadd.f32 %v1284_v14, %v2679_v16  ;;  %v1260_v25 = vpop.f32.mrf.mxu0  ;;  %v1273_v30 = vpop.f32.mrf.mxu1  ;;  %v1298_v11 = vadd.f32 %v1297_v15, %v2680_v24  ;;  %1437 = vmatpush.msrb.mxu1 %v1408_v5  ;;  %v1750_v24 = vld [vmem:[%s2635_s9] ss:$0 sm:$0xff] }
 0x58a   :  { %v1407_v25 = vld [vmem:[%s2632_s6 + $0x10] sm:$0xff]  ;;  %v1406_v30 = vld [vmem:[%s2632_s6 + $0x8] sm:$0xff] }
 0x58b   :  { %v1705_v38 = vmul.f32 -1.442695, %v1285_v17  ;;  %1438 = vmatpush.msrb.mxu1 %v1407_v25 }
 0x58c   :  { %v1864_v49 = vpop.eup %1863 }
 0x58d   :  { %v1866_v51 = vpop.eup %1865  ;;  %v1310_v52 = vadd.f32 1.0, %v1864_v49  ;;  %1867 = vpow2.f32 %v1705_v38  ;;  %1439 = vmatpush.msrb.mxu1 %v1406_v30  ;;  %v1453_v38 = vld [vmem:[%s2634_s8 + $0x38] sm:$0xff]  ;;  %v1451_v49 = vld [vmem:[%s2634_s8 + $0x28] sm:$0xff] }
 0x58e   :  { %v1311_v60 = vadd.f32 1.0, %v1866_v51  ;;  %1470 = vmatpush.msrb.mxu2 %v1453_v38  ;;  %v1450_v51 = vld [vmem:[%s2634_s8 + $0x20] sm:$0xff] }
 0x58f   :  { %1869 = vrcp.f32 %v1310_v52  ;;  %v1324_v0 = vand.u32 2147483648, %v1310_v52  ;;  %v1322_v55 = vand.u32 2147483647, %v1310_v52  ;;  %vm1318_vm8 = vweird.f32 %v1310_v52  ;;  %1440 = vmatpush.msrb.mxu1 %v1405_v31 }
 0x590   :  { %1871 = vrcp.f32 %v1311_v60  ;;  %v1286_v37 = vpop.f32.mrf.mxu2  ;;  %v1299_v21 = vpop.f32.mrf.mxu3  ;;  %v1339_v27 = vand.u32 2147483648, %v1311_v60  ;;  %v1337_v62 = vand.u32 2147483647, %v1311_v60  ;;  %vm1333_vm9 = vweird.f32 %v1311_v60  ;;  %1471 = vmatpush.msrb.mxu2 %v1452_v48 }
 0x591   :  { %v1325_v36 = vor.u32 1.1754944e-38, %v1324_v0  ;;  %vm1323_vm12 = vcmp.eq.f32.partialorder %v1322_v55, 8.507059e+37 }
 0x592   :  { %v1340_v18 = vor.u32 1.1754944e-38, %v1339_v27  ;;  %vm1338_vm13 = vcmp.eq.f32.partialorder %v1337_v62, 8.507059e+37  ;;  %1472 = vmatpush.msrb.mxu2 %v1451_v49 }
 0x593   :  { %v1868_v3 = vpop.eup %1867 }
 0x594   :  { %v2545_v13 = vadd.f32 1.0, %v1868_v3  ;;  %1473 = vmatpush.msrb.mxu2 %v1450_v51  ;;  %v1749_v3 = vld [vmem:[%s2633_s7] ss:$0 sm:$0xff]  ;;  %s1939_s7 = smov [#allocation5]  }
 0x595   :  { %v1870_v23 = vpop.eup %1869 }
 0x596   :  { %v1872_v22 = vpop.eup %1871  ;;  %v1314_v28 = vmul.f32 %v1870_v23, %v1310_v52  ;;  %1873 = vrcp.f32 %v2545_v13  ;;  %vm1319_vm6 = vweird.f32 %v1870_v23  ;;  %v1354_v6 = vand.u32 2147483648, %v2545_v13  ;;  %v1449_v52 = vld [vmem:[%s2634_s8 + $0x18] sm:$0xff] }
 0x597   :  { %v1329_v40 = vmul.f32 %v1872_v22, %v1311_v60  ;;  %1875 = vtanh.f32 %v1298_v11  ;;  %vm1334_vm7 = vweird.f32 %v1872_v22  ;;  %vm1320_vm10 = vmor %vm1318_vm8, %vm1319_vm6  ;;  %vm1348_vm15 = vweird.f32 %v2545_v13  ;;  %v1448_v60 = vld [vmem:[%s2634_s8 + $0x10] sm:$0xff]  ;;  %1474 = vmatpush.msrb.mxu2 %v1449_v52  ;;  %s1510_s8 = sshll.u32 %s1939_s7, 4  ;;  %s1511_s8 = int_to_ptr.vmem [resolvable:$true] %s1510_s8 }
 0x598   :  { %v1315_v12 = vsub.f32 1.0, %v1314_v28  ;;  %vm1335_vm11 = vmor %vm1333_vm9, %vm1334_vm7  ;;  %v1355_v14 = vor.u32 1.1754944e-38, %v1354_v6 }
 0x599   :  { %v1330_v50 = vsub.f32 1.0, %v1329_v40  ;;  %1475 = vmatpush.msrb.mxu2 %v1448_v60 }
 0x59a   :  { %v1316_v39 = vmul.f32 %v1870_v23, %v1315_v12 }
 0x59b   :  { %v1331_v9 = vmul.f32 %v1872_v22, %v1330_v50  ;;  %1476 = vmatpush.msrb.mxu2 %v1447_v35 }
 0x59c   :  { %v1874_v59 = vpop.eup %1873  ;;  %v1317_v43 = vadd.f32 %v1870_v23, %v1316_v39 }
 0x59d   :  { %v1344_v54 = vmul.f32 %v1874_v59, %v2545_v13  ;;  %v1332_v20 = vadd.f32 %v1872_v22, %v1331_v9  ;;  %v1876_v32 = vpop.eup %1875  ;;  %vm1349_vm14 = vweird.f32 %v1874_v59  ;;  %1477 = vmatpush.msrb.mxu2 %v1446_v47 }
 0x59e   :  { %v1321_v19 = vsel %vm1320_vm10, %v1870_v23, %v1317_v43  ;;  %vm1350_vm0 = vmor %vm1348_vm15, %vm1349_vm14 }
 0x59f   :  { %v1345_v33 = vsub.f32 1.0, %v1344_v54  ;;  %v1326_v34 = vsel %vm1323_vm12, %v1325_v36, %v1321_v19  ;;  %v1336_v41 = vsel %vm1335_vm11, %v1872_v22, %v1332_v20 }
 0x5a0   :  { %v1341_v44 = vsel %vm1338_vm13, %v1340_v18, %v1336_v41  ;;  %v1360_v45 = vmul.f32 %v1876_v32, %v1326_v34 }
 0x5a1   :  { %v1346_v53 = vmul.f32 %v1874_v59, %v1345_v33  ;;  %v1359_v56 = vmul.f32 %v1341_v44, %v2479_v26  ;;  %v1352_v26 = vand.u32 2147483647, %v2545_v13 }
 0x5a3   :  { %v1361_v58 = vadd.f32 %v1360_v45, %v1359_v56  ;;  %v1347_v2 = vadd.f32 %v1874_v59, %v1346_v53  ;;  %vm1353_vm1 = vcmp.eq.f32.partialorder %v1352_v26, 8.507059e+37 }
 0x5a5   :  { %1877 = vtanh.f32 %v1361_v58  ;;  %v1351_v7 = vsel %vm1350_vm0, %v1874_v59, %v1347_v2 }
 0x5a6   :  { %v1356_v16 = vsel %vm1353_vm1, %v1355_v14, %v1351_v7 }
 0x5ab   :  { %v1878_v15 = vpop.eup %1877 }
 0x5ac   :  { %v1363_v17 = vmul.f32 %v1878_v15, %v1356_v16 }
 0x5ae   :  { %1400 = vmatmul.f32.vlgmr.msrb.gmra.mxu0 %v1363_v17 }
 0x62b   :  { %v1401_v42 = vpop.f32.mrf.mxu0 }
 0x62c   :  { %v1402_v37 = vadd.f32 %v1748_v61, %v1401_v42 }
 0x62e   :  { %v1404_v21 = vmax.f32 %v1402_v37, 0.0 }
 0x630   :  { %1441 = vmatmul.f32.vlgmr.msrb.gmra.mxu1 %v1404_v21 }
 0x6ad   :  { %v1442_v13 = vpop.f32.mrf.mxu1 }
 0x6ae   :  { %v1443_v63 = vadd.f32 %v1749_v3, %v1442_v13 }
 0x6b0   :  { %v1445_v23 = vmax.f32 %v1443_v63, 0.0 }
 0x6b2   :  { %1706 = vmatmul.msk.f32.vlgmr.msrb.gmra.mxu2 %vm1458_vm2, %v1445_v23 }
 0x735   :  { %v1479_v11 = vpop.f32.mrf.mxu2 }
 0x736   :  { %v1480_v22 = vadd.f32 %v1750_v24, %v1479_v11 }
 0x738   :  { %1482 = vmax.xlane.f32.xlu0 %v1480_v22 }
 0x7ab   :  { %v1483_v28 = vpop.xlane.xlu0 %1482 }
 0x7ac   :  { %v1484_v1 = vsub.f32 %v1480_v22, %v1483_v28 }
 0x7ae   :  { %v1485_v40 = vmul.f32 1.442695, %v1484_v1 }
 0x7b0   :  { %1879 = vpow2.f32 %v1485_v40 }
 0x7b6   :  { %v1880_v12 = vpop.eup %1879 }
 0x7b7   :  { %1487 = vadd.xlane.f32.xlu0 %v1880_v12 }
 0x82a   :  { %v1488_v10 = vpop.xlane.xlu0 %1487 }
 0x82b   :  { %1881 = vrcp.f32 %v1488_v10  ;;  %v1500_v39 = vand.u32 2147483648, %v1488_v10  ;;  %v1498_v4 = vand.u32 2147483647, %v1488_v10  ;;  %vm1494_vm4 = vweird.f32 %v1488_v10 }
 0x82d   :  { %v1501_v62 = vor.u32 1.1754944e-38, %v1500_v39  ;;  %vm1499_vm6 = vcmp.eq.f32.partialorder %v1498_v4, 8.507059e+37 }
 0x831   :  { %v1882_v50 = vpop.eup %1881 }
 0x832   :  { %v1490_v0 = vmul.f32 %v1882_v50, %v1488_v10  ;;  %vm1495_vm3 = vweird.f32 %v1882_v50 }
 0x833   :  { %vm1496_vm5 = vmor %vm1494_vm4, %vm1495_vm3 }
 0x834   :  { %v1491_v27 = vsub.f32 1.0, %v1490_v0 }
 0x836   :  { %v1492_v55 = vmul.f32 %v1882_v50, %v1491_v27 }
 0x838   :  { %v1493_v9 = vadd.f32 %v1882_v50, %v1492_v55 }
 0x83a   :  { %v1497_v59 = vsel %vm1496_vm5, %v1882_v50, %v1493_v9 }
 0x83b   :  { %v1502_v43 = vsel %vm1499_vm6, %v1501_v62, %v1497_v59 }
 0x83c   :  { %v1503_v8 = vmul.f32 %v1880_v12, %v1502_v43 }
 0x83e   :  { %1504 = vst [vmem:[#allocation5] sm:$0xff] %v1503_v8 }
 0x83f   :  { %1515 = dma.vmem_to_hbm [thread:$0]  %s1511_s8, 128, %s1513_s21, [#allocation4]  }
 0x840   :  { %1933 = dma.done.wait [#allocation4], 128  }
 0x841   :  { %1934 = vsyncadd [#allocation4], 4294967168 }
 0x842   :  { %1520 = vsyncpa [#allocation3], 1 }
 0x843   :  { %1521 = vsyncpa [#allocation4], 1 }

</bundles_post_ra>
